<compile_context>
chip_gen: v6e
topology: v6e:2x2x1
jax: 0.10.0
libtpu: 0.0.40
codegen_flags: <defaults>
</compile_context>

<pallas_src>
import math

import jax
import jax.numpy as jnp
from jax.experimental import pallas as pl
from jax.experimental.pallas import tpu as pltpu


def _gru_kernel(pre_r_ref, pre_i_ref, pre_n_ref, h0_ref,
                w_hri_ref, w_c_ref,
                out_ref, h_last_ref,
                h_scratch):
    c = pl.program_id(0)
    n_chunks = pl.num_programs(0)
    TT = out_ref.shape[0]
    H = h0_ref.shape[1]

    # Initialise the recurrent state from the provided hidden on the first chunk.
    @pl.when(c == 0)
    def _():
        h_scratch[...] = h0_ref[...].astype(jnp.float32)

    # Load weights once per grid step (they are VMEM-resident constants).
    w_hri = w_hri_ref[...].astype(jnp.float32)   # (H, 2H): [reset | input] gate columns
    w_c = w_c_ref[...].astype(jnp.float32)       # (H, H):  candidate

    h = h_scratch[...]                           # (B, H) f32

    # Statically unrolled inner recurrence over the TT timesteps in this chunk.
    # (Sequential dependence through `h` bounds live ranges naturally.)
    for tt in range(TT):
        pre_r = pre_r_ref[tt].astype(jnp.float32)   # i_r + p_r + b_in_r + b_p_r + b_h_r
        pre_i = pre_i_ref[tt].astype(jnp.float32)   # i_i + p_i + b_in_i + b_p_i + b_h_i
        pre_n = pre_n_ref[tt].astype(jnp.float32)   # i_n + p_n + b_in_n + b_p_n + b_c

        # One fused matmul for both hidden gates.
        hg = jnp.dot(h, w_hri, preferred_element_type=jnp.float32)   # (B, 2H)
        resetgate = jax.nn.sigmoid(pre_r + hg[:, :H])
        inputgate = jax.nn.sigmoid(pre_i + hg[:, H:])
        newgate = jnp.tanh(
            pre_n + jnp.dot(resetgate * h, w_c, preferred_element_type=jnp.float32))

        h = h + inputgate * (newgate - h)
        out_ref[tt] = h.astype(out_ref.dtype)

    h_scratch[...] = h

    # Only write the final hidden once, on the last chunk.
    @pl.when(c == n_chunks - 1)
    def _():
        h_last_ref[...] = h.astype(h_last_ref.dtype)


def conditional_gru_forward(x, hidden, ctx, params):
    """x: (B, T, D), hidden: (B, H), ctx: (B, H).

    Returns (output (B, T, H), hidden (B, H)) — matches the PyTorch module.
    """
    B, T, D = x.shape
    H = hidden.shape[1]

    w_in, b_in, w_h, b_h, w_p, b_p, w_c, b_c = params

    # --- Hoisted, batched projections (done once by XLA, outside the loop) ---
    # Peephole projection is time-invariant:
    peep = jnp.dot(ctx, w_p, preferred_element_type=jnp.float32) + b_p      # (B, 3H)
    # Input projection for all timesteps, produced time-major directly:
    pre = jnp.einsum('btd,dk->tbk', x, w_in,
                     preferred_element_type=jnp.float32)                     # (T, B, 3H)
    # Fold every hidden-state-independent bias in (b_in, peep(+b_p), b_h, b_c):
    bias_fold = jnp.concatenate([b_h, b_c]).astype(jnp.float32)              # (3H,)
    pre = pre + (b_in.astype(jnp.float32) + bias_fold)[None, None, :] + peep[None]
    # Stream pre-activations at the input dtype (halves HBM traffic for bf16).
    pre = pre.astype(x.dtype)

    # Lane-friendly per-gate tensors (last dim = H each).
    pre_r = pre[..., 0 * H:1 * H]
    pre_i = pre[..., 1 * H:2 * H]
    pre_n = pre[..., 2 * H:3 * H]

    # Timesteps per grid step (amortize per-step pipeline overhead).
    TT = next(tt for tt in (32, 16, 8, 4, 2, 1) if T % tt == 0)
    n_chunks = T // TT

    step_spec = pl.BlockSpec((TT, B, H), lambda c: (c, 0, 0))
    const2d = lambda shape: pl.BlockSpec(shape, lambda c: (0, 0))

    out_tm, h_last = pl.pallas_call(
        _gru_kernel,
        out_shape=(jax.ShapeDtypeStruct((T, B, H), x.dtype),
                   jax.ShapeDtypeStruct((B, H), x.dtype)),
        grid_spec=pltpu.PrefetchScalarGridSpec(
            num_scalar_prefetch=0,
            grid=(n_chunks,),
            in_specs=[
                step_spec,               # pre_r
                step_spec,               # pre_i
                step_spec,               # pre_n
                const2d((B, H)),         # hidden init
                const2d((H, 2 * H)),     # W_h (reset|input gate columns, fused)
                const2d((H, H)),         # W_c (candidate)
            ],
            out_specs=[
                step_spec,               # per-step outputs, time-major
                const2d((B, H)),         # final hidden
            ],
            scratch_shapes=[pltpu.VMEM((B, H), jnp.float32)],
        ),
        compiler_params=pltpu.CompilerParams(
            dimension_semantics=("arbitrary",)),
    )(pre_r, pre_i, pre_n, hidden, w_h, w_c)

    output = jnp.transpose(out_tm, (1, 0, 2))  # back to (B, T, H)
    return output, h_last


def init_params(key, input_dim, hidden_dim):
    """Deterministic init matching nn.Linear shapes; weights stored transposed (in, out)."""
    stdv = 1.0 / math.sqrt(hidden_dim)
    keys = jax.random.split(key, 8)
    u = lambda k, shape: jax.random.uniform(k, shape, jnp.float32, -stdv, stdv)
    w_in = u(keys[0], (input_dim, 3 * hidden_dim))
    b_in = u(keys[1], (3 * hidden_dim,))
    w_h = u(keys[2], (hidden_dim, 2 * hidden_dim))
    b_h = u(keys[3], (2 * hidden_dim,))
    w_p = u(keys[4], (hidden_dim, 3 * hidden_dim))
    b_p = u(keys[5], (3 * hidden_dim,))
    w_c = u(keys[6], (hidden_dim, hidden_dim))
    b_c = u(keys[7], (hidden_dim,))
    return (w_in, b_in, w_h, b_h, w_p, b_p, w_c, b_c)


def conditional_gru_reference(x, hidden, ctx, params):
    """Pure-JAX reference mirroring the PyTorch forward."""
    w_in, b_in, w_h, b_h, w_p, b_p, w_c, b_c = params
    H = hidden.shape[1]

    def recurrence(h, x_t):
        ig = x_t @ w_in + b_in
        hg = h @ w_h + b_h
        pg = ctx @ w_p + b_p
        i_r, i_i, i_n = ig[:, :H], ig[:, H:2 * H], ig[:, 2 * H:]
        h_r, h_i = hg[:, :H], hg[:, H:]
        p_r, p_i, p_n = pg[:, :H], pg[:, H:2 * H], pg[:, 2 * H:]
        resetgate = jax.nn.sigmoid(i_r + h_r + p_r)
        inputgate = jax.nn.sigmoid(i_i + h_i + p_i)
        h_n = (resetgate * h) @ w_c + b_c
        newgate = jnp.tanh(i_n + h_n + p_n)
        hy = h + inputgate * (newgate - h)
        return hy, hy

    x_tm = jnp.transpose(x, (1, 0, 2))
    h_last, out_tm = jax.lax.scan(recurrence, hidden, x_tm)
    return jnp.transpose(out_tm, (1, 0, 2)), h_last


if __name__ == "__main__":
    B, T, D, H = 4, 8, 16, 32

    key = jax.random.PRNGKey(0)
    k_x, k_h, k_c, k_p = jax.random.split(key, 4)
    x = jax.random.normal(k_x, (B, T, D), jnp.float32)
    hidden = jax.random.normal(k_h, (B, H), jnp.float32)
    ctx = jax.random.normal(k_c, (B, H), jnp.float32)
    params = init_params(k_p, D, H)

    out, h_last = conditional_gru_forward(x, hidden, ctx, params)
    out = jax.block_until_ready(out)
    h_last = jax.block_until_ready(h_last)

    out_ref, h_ref = conditional_gru_reference(x, hidden, ctx, params)
    assert out.shape == (B, T, H) and h_last.shape == (B, H)
    assert jnp.allclose(out, out_ref, atol=1e-5, rtol=1e-5)
    assert jnp.allclose(h_last, h_ref, atol=1e-5, rtol=1e-5)

    print("KERNEL_OK")
</pallas_src>

<mosaic_0001>
module attributes {stable_mosaic.version = 11 : i64} {
  func.func @_gru_kernel(%arg0: i32, %arg1: memref<8x4x32xf32, #tpu.memory_space<vmem>>, %arg2: memref<8x4x32xf32, #tpu.memory_space<vmem>>, %arg3: memref<8x4x32xf32, #tpu.memory_space<vmem>>, %arg4: memref<4x32xf32, #tpu.memory_space<vmem>>, %arg5: memref<32x64xf32, #tpu.memory_space<vmem>>, %arg6: memref<32x32xf32, #tpu.memory_space<vmem>>, %arg7: memref<8x4x32xf32, #tpu.memory_space<vmem>>, %arg8: memref<4x32xf32, #tpu.memory_space<vmem>>, %arg9: memref<4x32xf32, #tpu.memory_space<vmem>>) attributes {dimension_semantics = [#tpu.dimension_semantics<arbitrary>], iteration_bounds = array<i64: 1>, scalar_prefetch = 0 : i64, scratch_operands = 1 : i64, tpu.core_type = #tpu.core_type<tc>, window_params = [{transform_indices = @transform_0, window_bounds = array<i64: 8, 4, 32>}, {transform_indices = @transform_1, window_bounds = array<i64: 8, 4, 32>}, {transform_indices = @transform_2, window_bounds = array<i64: 8, 4, 32>}, {pipeline_mode = #tpu.pipeline_mode<synchronous>, transform_indices = @transform_3, window_bounds = array<i64: 4, 32>}, {pipeline_mode = #tpu.pipeline_mode<synchronous>, transform_indices = @transform_4, window_bounds = array<i64: 32, 64>}, {pipeline_mode = #tpu.pipeline_mode<synchronous>, transform_indices = @transform_5, window_bounds = array<i64: 32, 32>}, {transform_indices = @transform_6, window_bounds = array<i64: 8, 4, 32>}, {pipeline_mode = #tpu.pipeline_mode<synchronous>, transform_indices = @transform_7, window_bounds = array<i64: 4, 32>}]} {
    %c0_i32 = arith.constant 0 : i32
    %0 = arith.cmpi eq, %arg0, %c0_i32 : i32
    %1 = arith.extui %0 : i1 to i32
    %c0_i32_0 = arith.constant 0 : i32
    %2 = arith.cmpi ne, %1, %c0_i32_0 : i32
    scf.if %2 {
      %c0_130 = arith.constant 0 : index
      %c0_131 = arith.constant 0 : index
      %258 = vector.load %arg4[%c0_130, %c0_131] : memref<4x32xf32, #tpu.memory_space<vmem>>, vector<4x32xf32>
      %c0_132 = arith.constant 0 : index
      %c0_133 = arith.constant 0 : index
      %259 = vector.load %arg9[%c0_132, %c0_133] : memref<4x32xf32, #tpu.memory_space<vmem>>, vector<4x32xf32>
      tpu.vector_store %arg9[%c0_132, %c0_133], %258 {strides = array<i32>} : memref<4x32xf32, #tpu.memory_space<vmem>>, vector<4x32xf32>,
    } else {
    }
    %c0 = arith.constant 0 : index
    %c0_1 = arith.constant 0 : index
    %3 = vector.load %arg5[%c0, %c0_1] : memref<32x64xf32, #tpu.memory_space<vmem>>, vector<32x64xf32>
    %c0_2 = arith.constant 0 : index
    %c0_3 = arith.constant 0 : index
    %4 = vector.load %arg6[%c0_2, %c0_3] : memref<32x32xf32, #tpu.memory_space<vmem>>, vector<32x32xf32>
    %c0_4 = arith.constant 0 : index
    %c0_5 = arith.constant 0 : index
    %5 = vector.load %arg9[%c0_4, %c0_5] : memref<4x32xf32, #tpu.memory_space<vmem>>, vector<4x32xf32>
    %c0_6 = arith.constant 0 : index
    %c0_7 = arith.constant 0 : index
    %c0_8 = arith.constant 0 : index
    %6 = vector.load %arg1[%c0_6, %c0_7, %c0_8] : memref<8x4x32xf32, #tpu.memory_space<vmem>>, vector<1x4x32xf32>
    %7 = vector.shape_cast %6 : vector<1x4x32xf32> to vector<4x32xf32>
    %c0_9 = arith.constant 0 : index
    %c0_10 = arith.constant 0 : index
    %c0_11 = arith.constant 0 : index
    %8 = vector.load %arg2[%c0_9, %c0_10, %c0_11] : memref<8x4x32xf32, #tpu.memory_space<vmem>>, vector<1x4x32xf32>
    %9 = vector.shape_cast %8 : vector<1x4x32xf32> to vector<4x32xf32>
    %c0_12 = arith.constant 0 : index
    %c0_13 = arith.constant 0 : index
    %c0_14 = arith.constant 0 : index
    %10 = vector.load %arg3[%c0_12, %c0_13, %c0_14] : memref<8x4x32xf32, #tpu.memory_space<vmem>>, vector<1x4x32xf32>
    %11 = vector.shape_cast %10 : vector<1x4x32xf32> to vector<4x32xf32>
    %cst = arith.constant dense<0.000000e+00> : vector<4x64xf32>
    %12 = tpu.matmul %5, %3, %cst {dimension_numbers = #tpu.dot_dimension_numbers<[1], [0], [0], [1], [0, 0, 1, 1], [], []>} : vector<4x32xf32>, vector<32x64xf32>, vector<4x64xf32> -> vector<4x64xf32>
    %13 = vector.extract_strided_slice %12 {offsets = [0, 0], sizes = [4, 32], strides = [1, 1]} : vector<4x64xf32> to vector<4x32xf32>
    %14 = arith.addf %7, %13 : vector<4x32xf32>
    %15 = arith.negf %14 : vector<4x32xf32>
    %16 = math.exp %15 : vector<4x32xf32>
    %cst_15 = arith.constant 1.000000e+00 : f32
    %17 = vector.broadcast %cst_15 : f32 to vector<4x32xf32>
    %18 = arith.addf %17, %16 : vector<4x32xf32>
    %19 = arith.divf %17, %18 : vector<4x32xf32>
    %20 = vector.extract_strided_slice %12 {offsets = [0, 32], sizes = [4, 32], strides = [1, 1]} : vector<4x64xf32> to vector<4x32xf32>
    %21 = arith.addf %9, %20 : vector<4x32xf32>
    %22 = arith.negf %21 : vector<4x32xf32>
    %23 = math.exp %22 : vector<4x32xf32>
    %cst_16 = arith.constant 1.000000e+00 : f32
    %24 = vector.broadcast %cst_16 : f32 to vector<4x32xf32>
    %25 = arith.addf %24, %23 : vector<4x32xf32>
    %26 = arith.divf %24, %25 : vector<4x32xf32>
    %27 = arith.mulf %19, %5 : vector<4x32xf32>
    %cst_17 = arith.constant dense<0.000000e+00> : vector<4x32xf32>
    %28 = tpu.matmul %27, %4, %cst_17 {dimension_numbers = #tpu.dot_dimension_numbers<[1], [0], [0], [1], [0, 0, 1, 1], [], []>} : vector<4x32xf32>, vector<32x32xf32>, vector<4x32xf32> -> vector<4x32xf32>
    %29 = arith.addf %11, %28 : vector<4x32xf32>
    %30 = math.tanh %29 : vector<4x32xf32>
    %31 = arith.subf %30, %5 : vector<4x32xf32>
    %32 = arith.mulf %26, %31 : vector<4x32xf32>
    %33 = arith.addf %5, %32 : vector<4x32xf32>
    %c0_18 = arith.constant 0 : index
    %c0_19 = arith.constant 0 : index
    %c0_20 = arith.constant 0 : index
    %34 = vector.load %arg7[%c0_18, %c0_19, %c0_20] : memref<8x4x32xf32, #tpu.memory_space<vmem>>, vector<1x4x32xf32>
    %35 = vector.shape_cast %34 : vector<1x4x32xf32> to vector<4x32xf32>
    %36 = vector.shape_cast %33 : vector<4x32xf32> to vector<1x4x32xf32>
    tpu.vector_store %arg7[%c0_18, %c0_19, %c0_20], %36 {strides = array<i32>} : memref<8x4x32xf32, #tpu.memory_space<vmem>>, vector<1x4x32xf32>,
    %c1 = arith.constant 1 : index
    %c0_21 = arith.constant 0 : index
    %c0_22 = arith.constant 0 : index
    %37 = vector.load %arg1[%c1, %c0_21, %c0_22] : memref<8x4x32xf32, #tpu.memory_space<vmem>>, vector<1x4x32xf32>
    %38 = vector.shape_cast %37 : vector<1x4x32xf32> to vector<4x32xf32>
    %c1_23 = arith.constant 1 : index
    %c0_24 = arith.constant 0 : index
    %c0_25 = arith.constant 0 : index
    %39 = vector.load %arg2[%c1_23, %c0_24, %c0_25] : memref<8x4x32xf32, #tpu.memory_space<vmem>>, vector<1x4x32xf32>
    %40 = vector.shape_cast %39 : vector<1x4x32xf32> to vector<4x32xf32>
    %c1_26 = arith.constant 1 : index
    %c0_27 = arith.constant 0 : index
    %c0_28 = arith.constant 0 : index
    %41 = vector.load %arg3[%c1_26, %c0_27, %c0_28] : memref<8x4x32xf32, #tpu.memory_space<vmem>>, vector<1x4x32xf32>
    %42 = vector.shape_cast %41 : vector<1x4x32xf32> to vector<4x32xf32>
    %cst_29 = arith.constant dense<0.000000e+00> : vector<4x64xf32>
    %43 = tpu.matmul %33, %3, %cst_29 {dimension_numbers = #tpu.dot_dimension_numbers<[1], [0], [0], [1], [0, 0, 1, 1], [], []>} : vector<4x32xf32>, vector<32x64xf32>, vector<4x64xf32> -> vector<4x64xf32>
    %44 = vector.extract_strided_slice %43 {offsets = [0, 0], sizes = [4, 32], strides = [1, 1]} : vector<4x64xf32> to vector<4x32xf32>
    %45 = arith.addf %38, %44 : vector<4x32xf32>
    %46 = arith.negf %45 : vector<4x32xf32>
    %47 = math.exp %46 : vector<4x32xf32>
    %cst_30 = arith.constant 1.000000e+00 : f32
    %48 = vector.broadcast %cst_30 : f32 to vector<4x32xf32>
    %49 = arith.addf %48, %47 : vector<4x32xf32>
    %50 = arith.divf %48, %49 : vector<4x32xf32>
    %51 = vector.extract_strided_slice %43 {offsets = [0, 32], sizes = [4, 32], strides = [1, 1]} : vector<4x64xf32> to vector<4x32xf32>
    %52 = arith.addf %40, %51 : vector<4x32xf32>
    %53 = arith.negf %52 : vector<4x32xf32>
    %54 = math.exp %53 : vector<4x32xf32>
    %cst_31 = arith.constant 1.000000e+00 : f32
    %55 = vector.broadcast %cst_31 : f32 to vector<4x32xf32>
    %56 = arith.addf %55, %54 : vector<4x32xf32>
    %57 = arith.divf %55, %56 : vector<4x32xf32>
    %58 = arith.mulf %50, %33 : vector<4x32xf32>
    %cst_32 = arith.constant dense<0.000000e+00> : vector<4x32xf32>
    %59 = tpu.matmul %58, %4, %cst_32 {dimension_numbers = #tpu.dot_dimension_numbers<[1], [0], [0], [1], [0, 0, 1, 1], [], []>} : vector<4x32xf32>, vector<32x32xf32>, vector<4x32xf32> -> vector<4x32xf32>
    %60 = arith.addf %42, %59 : vector<4x32xf32>
    %61 = math.tanh %60 : vector<4x32xf32>
    %62 = arith.subf %61, %33 : vector<4x32xf32>
    %63 = arith.mulf %57, %62 : vector<4x32xf32>
    %64 = arith.addf %33, %63 : vector<4x32xf32>
    %c1_33 = arith.constant 1 : index
    %c0_34 = arith.constant 0 : index
    %c0_35 = arith.constant 0 : index
    %65 = vector.load %arg7[%c1_33, %c0_34, %c0_35] : memref<8x4x32xf32, #tpu.memory_space<vmem>>, vector<1x4x32xf32>
    %66 = vector.shape_cast %65 : vector<1x4x32xf32> to vector<4x32xf32>
    %67 = vector.shape_cast %64 : vector<4x32xf32> to vector<1x4x32xf32>
    tpu.vector_store %arg7[%c1_33, %c0_34, %c0_35], %67 {strides = array<i32>} : memref<8x4x32xf32, #tpu.memory_space<vmem>>, vector<1x4x32xf32>,
    %c2 = arith.constant 2 : index
    %c0_36 = arith.constant 0 : index
    %c0_37 = arith.constant 0 : index
    %68 = vector.load %arg1[%c2, %c0_36, %c0_37] : memref<8x4x32xf32, #tpu.memory_space<vmem>>, vector<1x4x32xf32>
    %69 = vector.shape_cast %68 : vector<1x4x32xf32> to vector<4x32xf32>
    %c2_38 = arith.constant 2 : index
    %c0_39 = arith.constant 0 : index
    %c0_40 = arith.constant 0 : index
    %70 = vector.load %arg2[%c2_38, %c0_39, %c0_40] : memref<8x4x32xf32, #tpu.memory_space<vmem>>, vector<1x4x32xf32>
    %71 = vector.shape_cast %70 : vector<1x4x32xf32> to vector<4x32xf32>
    %c2_41 = arith.constant 2 : index
    %c0_42 = arith.constant 0 : index
    %c0_43 = arith.constant 0 : index
    %72 = vector.load %arg3[%c2_41, %c0_42, %c0_43] : memref<8x4x32xf32, #tpu.memory_space<vmem>>, vector<1x4x32xf32>
    %73 = vector.shape_cast %72 : vector<1x4x32xf32> to vector<4x32xf32>
    %cst_44 = arith.constant dense<0.000000e+00> : vector<4x64xf32>
    %74 = tpu.matmul %64, %3, %cst_44 {dimension_numbers = #tpu.dot_dimension_numbers<[1], [0], [0], [1], [0, 0, 1, 1], [], []>} : vector<4x32xf32>, vector<32x64xf32>, vector<4x64xf32> -> vector<4x64xf32>
    %75 = vector.extract_strided_slice %74 {offsets = [0, 0], sizes = [4, 32], strides = [1, 1]} : vector<4x64xf32> to vector<4x32xf32>
    %76 = arith.addf %69, %75 : vector<4x32xf32>
    %77 = arith.negf %76 : vector<4x32xf32>
    %78 = math.exp %77 : vector<4x32xf32>
    %cst_45 = arith.constant 1.000000e+00 : f32
    %79 = vector.broadcast %cst_45 : f32 to vector<4x32xf32>
    %80 = arith.addf %79, %78 : vector<4x32xf32>
    %81 = arith.divf %79, %80 : vector<4x32xf32>
    %82 = vector.extract_strided_slice %74 {offsets = [0, 32], sizes = [4, 32], strides = [1, 1]} : vector<4x64xf32> to vector<4x32xf32>
    %83 = arith.addf %71, %82 : vector<4x32xf32>
    %84 = arith.negf %83 : vector<4x32xf32>
    %85 = math.exp %84 : vector<4x32xf32>
    %cst_46 = arith.constant 1.000000e+00 : f32
    %86 = vector.broadcast %cst_46 : f32 to vector<4x32xf32>
    %87 = arith.addf %86, %85 : vector<4x32xf32>
    %88 = arith.divf %86, %87 : vector<4x32xf32>
    %89 = arith.mulf %81, %64 : vector<4x32xf32>
    %cst_47 = arith.constant dense<0.000000e+00> : vector<4x32xf32>
    %90 = tpu.matmul %89, %4, %cst_47 {dimension_numbers = #tpu.dot_dimension_numbers<[1], [0], [0], [1], [0, 0, 1, 1], [], []>} : vector<4x32xf32>, vector<32x32xf32>, vector<4x32xf32> -> vector<4x32xf32>
    %91 = arith.addf %73, %90 : vector<4x32xf32>
    %92 = math.tanh %91 : vector<4x32xf32>
    %93 = arith.subf %92, %64 : vector<4x32xf32>
    %94 = arith.mulf %88, %93 : vector<4x32xf32>
    %95 = arith.addf %64, %94 : vector<4x32xf32>
    %c2_48 = arith.constant 2 : index
    %c0_49 = arith.constant 0 : index
    %c0_50 = arith.constant 0 : index
    %96 = vector.load %arg7[%c2_48, %c0_49, %c0_50] : memref<8x4x32xf32, #tpu.memory_space<vmem>>, vector<1x4x32xf32>
    %97 = vector.shape_cast %96 : vector<1x4x32xf32> to vector<4x32xf32>
    %98 = vector.shape_cast %95 : vector<4x32xf32> to vector<1x4x32xf32>
    tpu.vector_store %arg7[%c2_48, %c0_49, %c0_50], %98 {strides = array<i32>} : memref<8x4x32xf32, #tpu.memory_space<vmem>>, vector<1x4x32xf32>,
    %c3 = arith.constant 3 : index
    %c0_51 = arith.constant 0 : index
    %c0_52 = arith.constant 0 : index
    %99 = vector.load %arg1[%c3, %c0_51, %c0_52] : memref<8x4x32xf32, #tpu.memory_space<vmem>>, vector<1x4x32xf32>
    %100 = vector.shape_cast %99 : vector<1x4x32xf32> to vector<4x32xf32>
    %c3_53 = arith.constant 3 : index
    %c0_54 = arith.constant 0 : index
    %c0_55 = arith.constant 0 : index
    %101 = vector.load %arg2[%c3_53, %c0_54, %c0_55] : memref<8x4x32xf32, #tpu.memory_space<vmem>>, vector<1x4x32xf32>
    %102 = vector.shape_cast %101 : vector<1x4x32xf32> to vector<4x32xf32>
    %c3_56 = arith.constant 3 : index
    %c0_57 = arith.constant 0 : index
    %c0_58 = arith.constant 0 : index
    %103 = vector.load %arg3[%c3_56, %c0_57, %c0_58] : memref<8x4x32xf32, #tpu.memory_space<vmem>>, vector<1x4x32xf32>
    %104 = vector.shape_cast %103 : vector<1x4x32xf32> to vector<4x32xf32>
    %cst_59 = arith.constant dense<0.000000e+00> : vector<4x64xf32>
    %105 = tpu.matmul %95, %3, %cst_59 {dimension_numbers = #tpu.dot_dimension_numbers<[1], [0], [0], [1], [0, 0, 1, 1], [], []>} : vector<4x32xf32>, vector<32x64xf32>, vector<4x64xf32> -> vector<4x64xf32>
    %106 = vector.extract_strided_slice %105 {offsets = [0, 0], sizes = [4, 32], strides = [1, 1]} : vector<4x64xf32> to vector<4x32xf32>
    %107 = arith.addf %100, %106 : vector<4x32xf32>
    %108 = arith.negf %107 : vector<4x32xf32>
    %109 = math.exp %108 : vector<4x32xf32>
    %cst_60 = arith.constant 1.000000e+00 : f32
    %110 = vector.broadcast %cst_60 : f32 to vector<4x32xf32>
    %111 = arith.addf %110, %109 : vector<4x32xf32>
    %112 = arith.divf %110, %111 : vector<4x32xf32>
    %113 = vector.extract_strided_slice %105 {offsets = [0, 32], sizes = [4, 32], strides = [1, 1]} : vector<4x64xf32> to vector<4x32xf32>
    %114 = arith.addf %102, %113 : vector<4x32xf32>
    %115 = arith.negf %114 : vector<4x32xf32>
    %116 = math.exp %115 : vector<4x32xf32>
    %cst_61 = arith.constant 1.000000e+00 : f32
    %117 = vector.broadcast %cst_61 : f32 to vector<4x32xf32>
    %118 = arith.addf %117, %116 : vector<4x32xf32>
    %119 = arith.divf %117, %118 : vector<4x32xf32>
    %120 = arith.mulf %112, %95 : vector<4x32xf32>
    %cst_62 = arith.constant dense<0.000000e+00> : vector<4x32xf32>
    %121 = tpu.matmul %120, %4, %cst_62 {dimension_numbers = #tpu.dot_dimension_numbers<[1], [0], [0], [1], [0, 0, 1, 1], [], []>} : vector<4x32xf32>, vector<32x32xf32>, vector<4x32xf32> -> vector<4x32xf32>
    %122 = arith.addf %104, %121 : vector<4x32xf32>
    %123 = math.tanh %122 : vector<4x32xf32>
    %124 = arith.subf %123, %95 : vector<4x32xf32>
    %125 = arith.mulf %119, %124 : vector<4x32xf32>
    %126 = arith.addf %95, %125 : vector<4x32xf32>
    %c3_63 = arith.constant 3 : index
    %c0_64 = arith.constant 0 : index
    %c0_65 = arith.constant 0 : index
    %127 = vector.load %arg7[%c3_63, %c0_64, %c0_65] : memref<8x4x32xf32, #tpu.memory_space<vmem>>, vector<1x4x32xf32>
    %128 = vector.shape_cast %127 : vector<1x4x32xf32> to vector<4x32xf32>
    %129 = vector.shape_cast %126 : vector<4x32xf32> to vector<1x4x32xf32>
    tpu.vector_store %arg7[%c3_63, %c0_64, %c0_65], %129 {strides = array<i32>} : memref<8x4x32xf32, #tpu.memory_space<vmem>>, vector<1x4x32xf32>,
    %c4 = arith.constant 4 : index
    %c0_66 = arith.constant 0 : index
    %c0_67 = arith.constant 0 : index
    %130 = vector.load %arg1[%c4, %c0_66, %c0_67] : memref<8x4x32xf32, #tpu.memory_space<vmem>>, vector<1x4x32xf32>
    %131 = vector.shape_cast %130 : vector<1x4x32xf32> to vector<4x32xf32>
    %c4_68 = arith.constant 4 : index
    %c0_69 = arith.constant 0 : index
    %c0_70 = arith.constant 0 : index
    %132 = vector.load %arg2[%c4_68, %c0_69, %c0_70] : memref<8x4x32xf32, #tpu.memory_space<vmem>>, vector<1x4x32xf32>
    %133 = vector.shape_cast %132 : vector<1x4x32xf32> to vector<4x32xf32>
    %c4_71 = arith.constant 4 : index
    %c0_72 = arith.constant 0 : index
    %c0_73 = arith.constant 0 : index
    %134 = vector.load %arg3[%c4_71, %c0_72, %c0_73] : memref<8x4x32xf32, #tpu.memory_space<vmem>>, vector<1x4x32xf32>
    %135 = vector.shape_cast %134 : vector<1x4x32xf32> to vector<4x32xf32>
    %cst_74 = arith.constant dense<0.000000e+00> : vector<4x64xf32>
    %136 = tpu.matmul %126, %3, %cst_74 {dimension_numbers = #tpu.dot_dimension_numbers<[1], [0], [0], [1], [0, 0, 1, 1], [], []>} : vector<4x32xf32>, vector<32x64xf32>, vector<4x64xf32> -> vector<4x64xf32>
    %137 = vector.extract_strided_slice %136 {offsets = [0, 0], sizes = [4, 32], strides = [1, 1]} : vector<4x64xf32> to vector<4x32xf32>
    %138 = arith.addf %131, %137 : vector<4x32xf32>
    %139 = arith.negf %138 : vector<4x32xf32>
    %140 = math.exp %139 : vector<4x32xf32>
    %cst_75 = arith.constant 1.000000e+00 : f32
    %141 = vector.broadcast %cst_75 : f32 to vector<4x32xf32>
    %142 = arith.addf %141, %140 : vector<4x32xf32>
    %143 = arith.divf %141, %142 : vector<4x32xf32>
    %144 = vector.extract_strided_slice %136 {offsets = [0, 32], sizes = [4, 32], strides = [1, 1]} : vector<4x64xf32> to vector<4x32xf32>
    %145 = arith.addf %133, %144 : vector<4x32xf32>
    %146 = arith.negf %145 : vector<4x32xf32>
    %147 = math.exp %146 : vector<4x32xf32>
    %cst_76 = arith.constant 1.000000e+00 : f32
    %148 = vector.broadcast %cst_76 : f32 to vector<4x32xf32>
    %149 = arith.addf %148, %147 : vector<4x32xf32>
    %150 = arith.divf %148, %149 : vector<4x32xf32>
    %151 = arith.mulf %143, %126 : vector<4x32xf32>
    %cst_77 = arith.constant dense<0.000000e+00> : vector<4x32xf32>
    %152 = tpu.matmul %151, %4, %cst_77 {dimension_numbers = #tpu.dot_dimension_numbers<[1], [0], [0], [1], [0, 0, 1, 1], [], []>} : vector<4x32xf32>, vector<32x32xf32>, vector<4x32xf32> -> vector<4x32xf32>
    %153 = arith.addf %135, %152 : vector<4x32xf32>
    %154 = math.tanh %153 : vector<4x32xf32>
    %155 = arith.subf %154, %126 : vector<4x32xf32>
    %156 = arith.mulf %150, %155 : vector<4x32xf32>
    %157 = arith.addf %126, %156 : vector<4x32xf32>
    %c4_78 = arith.constant 4 : index
    %c0_79 = arith.constant 0 : index
    %c0_80 = arith.constant 0 : index
    %158 = vector.load %arg7[%c4_78, %c0_79, %c0_80] : memref<8x4x32xf32, #tpu.memory_space<vmem>>, vector<1x4x32xf32>
    %159 = vector.shape_cast %158 : vector<1x4x32xf32> to vector<4x32xf32>
    %160 = vector.shape_cast %157 : vector<4x32xf32> to vector<1x4x32xf32>
    tpu.vector_store %arg7[%c4_78, %c0_79, %c0_80], %160 {strides = array<i32>} : memref<8x4x32xf32, #tpu.memory_space<vmem>>, vector<1x4x32xf32>,
    %c5 = arith.constant 5 : index
    %c0_81 = arith.constant 0 : index
    %c0_82 = arith.constant 0 : index
    %161 = vector.load %arg1[%c5, %c0_81, %c0_82] : memref<8x4x32xf32, #tpu.memory_space<vmem>>, vector<1x4x32xf32>
    %162 = vector.shape_cast %161 : vector<1x4x32xf32> to vector<4x32xf32>
    %c5_83 = arith.constant 5 : index
    %c0_84 = arith.constant 0 : index
    %c0_85 = arith.constant 0 : index
    %163 = vector.load %arg2[%c5_83, %c0_84, %c0_85] : memref<8x4x32xf32, #tpu.memory_space<vmem>>, vector<1x4x32xf32>
    %164 = vector.shape_cast %163 : vector<1x4x32xf32> to vector<4x32xf32>
    %c5_86 = arith.constant 5 : index
    %c0_87 = arith.constant 0 : index
    %c0_88 = arith.constant 0 : index
    %165 = vector.load %arg3[%c5_86, %c0_87, %c0_88] : memref<8x4x32xf32, #tpu.memory_space<vmem>>, vector<1x4x32xf32>
    %166 = vector.shape_cast %165 : vector<1x4x32xf32> to vector<4x32xf32>
    %cst_89 = arith.constant dense<0.000000e+00> : vector<4x64xf32>
    %167 = tpu.matmul %157, %3, %cst_89 {dimension_numbers = #tpu.dot_dimension_numbers<[1], [0], [0], [1], [0, 0, 1, 1], [], []>} : vector<4x32xf32>, vector<32x64xf32>, vector<4x64xf32> -> vector<4x64xf32>
    %168 = vector.extract_strided_slice %167 {offsets = [0, 0], sizes = [4, 32], strides = [1, 1]} : vector<4x64xf32> to vector<4x32xf32>
    %169 = arith.addf %162, %168 : vector<4x32xf32>
    %170 = arith.negf %169 : vector<4x32xf32>
    %171 = math.exp %170 : vector<4x32xf32>
    %cst_90 = arith.constant 1.000000e+00 : f32
    %172 = vector.broadcast %cst_90 : f32 to vector<4x32xf32>
    %173 = arith.addf %172, %171 : vector<4x32xf32>
    %174 = arith.divf %172, %173 : vector<4x32xf32>
    %175 = vector.extract_strided_slice %167 {offsets = [0, 32], sizes = [4, 32], strides = [1, 1]} : vector<4x64xf32> to vector<4x32xf32>
    %176 = arith.addf %164, %175 : vector<4x32xf32>
    %177 = arith.negf %176 : vector<4x32xf32>
    %178 = math.exp %177 : vector<4x32xf32>
    %cst_91 = arith.constant 1.000000e+00 : f32
    %179 = vector.broadcast %cst_91 : f32 to vector<4x32xf32>
    %180 = arith.addf %179, %178 : vector<4x32xf32>
    %181 = arith.divf %179, %180 : vector<4x32xf32>
    %182 = arith.mulf %174, %157 : vector<4x32xf32>
    %cst_92 = arith.constant dense<0.000000e+00> : vector<4x32xf32>
    %183 = tpu.matmul %182, %4, %cst_92 {dimension_numbers = #tpu.dot_dimension_numbers<[1], [0], [0], [1], [0, 0, 1, 1], [], []>} : vector<4x32xf32>, vector<32x32xf32>, vector<4x32xf32> -> vector<4x32xf32>
    %184 = arith.addf %166, %183 : vector<4x32xf32>
    %185 = math.tanh %184 : vector<4x32xf32>
    %186 = arith.subf %185, %157 : vector<4x32xf32>
    %187 = arith.mulf %181, %186 : vector<4x32xf32>
    %188 = arith.addf %157, %187 : vector<4x32xf32>
    %c5_93 = arith.constant 5 : index
    %c0_94 = arith.constant 0 : index
    %c0_95 = arith.constant 0 : index
    %189 = vector.load %arg7[%c5_93, %c0_94, %c0_95] : memref<8x4x32xf32, #tpu.memory_space<vmem>>, vector<1x4x32xf32>
    %190 = vector.shape_cast %189 : vector<1x4x32xf32> to vector<4x32xf32>
    %191 = vector.shape_cast %188 : vector<4x32xf32> to vector<1x4x32xf32>
    tpu.vector_store %arg7[%c5_93, %c0_94, %c0_95], %191 {strides = array<i32>} : memref<8x4x32xf32, #tpu.memory_space<vmem>>, vector<1x4x32xf32>,
    %c6 = arith.constant 6 : index
    %c0_96 = arith.constant 0 : index
    %c0_97 = arith.constant 0 : index
    %192 = vector.load %arg1[%c6, %c0_96, %c0_97] : memref<8x4x32xf32, #tpu.memory_space<vmem>>, vector<1x4x32xf32>
    %193 = vector.shape_cast %192 : vector<1x4x32xf32> to vector<4x32xf32>
    %c6_98 = arith.constant 6 : index
    %c0_99 = arith.constant 0 : index
    %c0_100 = arith.constant 0 : index
    %194 = vector.load %arg2[%c6_98, %c0_99, %c0_100] : memref<8x4x32xf32, #tpu.memory_space<vmem>>, vector<1x4x32xf32>
    %195 = vector.shape_cast %194 : vector<1x4x32xf32> to vector<4x32xf32>
    %c6_101 = arith.constant 6 : index
    %c0_102 = arith.constant 0 : index
    %c0_103 = arith.constant 0 : index
    %196 = vector.load %arg3[%c6_101, %c0_102, %c0_103] : memref<8x4x32xf32, #tpu.memory_space<vmem>>, vector<1x4x32xf32>
    %197 = vector.shape_cast %196 : vector<1x4x32xf32> to vector<4x32xf32>
    %cst_104 = arith.constant dense<0.000000e+00> : vector<4x64xf32>
    %198 = tpu.matmul %188, %3, %cst_104 {dimension_numbers = #tpu.dot_dimension_numbers<[1], [0], [0], [1], [0, 0, 1, 1], [], []>} : vector<4x32xf32>, vector<32x64xf32>, vector<4x64xf32> -> vector<4x64xf32>
    %199 = vector.extract_strided_slice %198 {offsets = [0, 0], sizes = [4, 32], strides = [1, 1]} : vector<4x64xf32> to vector<4x32xf32>
    %200 = arith.addf %193, %199 : vector<4x32xf32>
    %201 = arith.negf %200 : vector<4x32xf32>
    %202 = math.exp %201 : vector<4x32xf32>
    %cst_105 = arith.constant 1.000000e+00 : f32
    %203 = vector.broadcast %cst_105 : f32 to vector<4x32xf32>
    %204 = arith.addf %203, %202 : vector<4x32xf32>
    %205 = arith.divf %203, %204 : vector<4x32xf32>
    %206 = vector.extract_strided_slice %198 {offsets = [0, 32], sizes = [4, 32], strides = [1, 1]} : vector<4x64xf32> to vector<4x32xf32>
    %207 = arith.addf %195, %206 : vector<4x32xf32>
    %208 = arith.negf %207 : vector<4x32xf32>
    %209 = math.exp %208 : vector<4x32xf32>
    %cst_106 = arith.constant 1.000000e+00 : f32
    %210 = vector.broadcast %cst_106 : f32 to vector<4x32xf32>
    %211 = arith.addf %210, %209 : vector<4x32xf32>
    %212 = arith.divf %210, %211 : vector<4x32xf32>
    %213 = arith.mulf %205, %188 : vector<4x32xf32>
    %cst_107 = arith.constant dense<0.000000e+00> : vector<4x32xf32>
    %214 = tpu.matmul %213, %4, %cst_107 {dimension_numbers = #tpu.dot_dimension_numbers<[1], [0], [0], [1], [0, 0, 1, 1], [], []>} : vector<4x32xf32>, vector<32x32xf32>, vector<4x32xf32> -> vector<4x32xf32>
    %215 = arith.addf %197, %214 : vector<4x32xf32>
    %216 = math.tanh %215 : vector<4x32xf32>
    %217 = arith.subf %216, %188 : vector<4x32xf32>
    %218 = arith.mulf %212, %217 : vector<4x32xf32>
    %219 = arith.addf %188, %218 : vector<4x32xf32>
    %c6_108 = arith.constant 6 : index
    %c0_109 = arith.constant 0 : index
    %c0_110 = arith.constant 0 : index
    %220 = vector.load %arg7[%c6_108, %c0_109, %c0_110] : memref<8x4x32xf32, #tpu.memory_space<vmem>>, vector<1x4x32xf32>
    %221 = vector.shape_cast %220 : vector<1x4x32xf32> to vector<4x32xf32>
    %222 = vector.shape_cast %219 : vector<4x32xf32> to vector<1x4x32xf32>
    tpu.vector_store %arg7[%c6_108, %c0_109, %c0_110], %222 {strides = array<i32>} : memref<8x4x32xf32, #tpu.memory_space<vmem>>, vector<1x4x32xf32>,
    %c7 = arith.constant 7 : index
    %c0_111 = arith.constant 0 : index
    %c0_112 = arith.constant 0 : index
    %223 = vector.load %arg1[%c7, %c0_111, %c0_112] : memref<8x4x32xf32, #tpu.memory_space<vmem>>, vector<1x4x32xf32>
    %224 = vector.shape_cast %223 : vector<1x4x32xf32> to vector<4x32xf32>
    %c7_113 = arith.constant 7 : index
    %c0_114 = arith.constant 0 : index
    %c0_115 = arith.constant 0 : index
    %225 = vector.load %arg2[%c7_113, %c0_114, %c0_115] : memref<8x4x32xf32, #tpu.memory_space<vmem>>, vector<1x4x32xf32>
    %226 = vector.shape_cast %225 : vector<1x4x32xf32> to vector<4x32xf32>
    %c7_116 = arith.constant 7 : index
    %c0_117 = arith.constant 0 : index
    %c0_118 = arith.constant 0 : index
    %227 = vector.load %arg3[%c7_116, %c0_117, %c0_118] : memref<8x4x32xf32, #tpu.memory_space<vmem>>, vector<1x4x32xf32>
    %228 = vector.shape_cast %227 : vector<1x4x32xf32> to vector<4x32xf32>
    %cst_119 = arith.constant dense<0.000000e+00> : vector<4x64xf32>
    %229 = tpu.matmul %219, %3, %cst_119 {dimension_numbers = #tpu.dot_dimension_numbers<[1], [0], [0], [1], [0, 0, 1, 1], [], []>} : vector<4x32xf32>, vector<32x64xf32>, vector<4x64xf32> -> vector<4x64xf32>
    %230 = vector.extract_strided_slice %229 {offsets = [0, 0], sizes = [4, 32], strides = [1, 1]} : vector<4x64xf32> to vector<4x32xf32>
    %231 = arith.addf %224, %230 : vector<4x32xf32>
    %232 = arith.negf %231 : vector<4x32xf32>
    %233 = math.exp %232 : vector<4x32xf32>
    %cst_120 = arith.constant 1.000000e+00 : f32
    %234 = vector.broadcast %cst_120 : f32 to vector<4x32xf32>
    %235 = arith.addf %234, %233 : vector<4x32xf32>
    %236 = arith.divf %234, %235 : vector<4x32xf32>
    %237 = vector.extract_strided_slice %229 {offsets = [0, 32], sizes = [4, 32], strides = [1, 1]} : vector<4x64xf32> to vector<4x32xf32>
    %238 = arith.addf %226, %237 : vector<4x32xf32>
    %239 = arith.negf %238 : vector<4x32xf32>
    %240 = math.exp %239 : vector<4x32xf32>
    %cst_121 = arith.constant 1.000000e+00 : f32
    %241 = vector.broadcast %cst_121 : f32 to vector<4x32xf32>
    %242 = arith.addf %241, %240 : vector<4x32xf32>
    %243 = arith.divf %241, %242 : vector<4x32xf32>
    %244 = arith.mulf %236, %219 : vector<4x32xf32>
    %cst_122 = arith.constant dense<0.000000e+00> : vector<4x32xf32>
    %245 = tpu.matmul %244, %4, %cst_122 {dimension_numbers = #tpu.dot_dimension_numbers<[1], [0], [0], [1], [0, 0, 1, 1], [], []>} : vector<4x32xf32>, vector<32x32xf32>, vector<4x32xf32> -> vector<4x32xf32>
    %246 = arith.addf %228, %245 : vector<4x32xf32>
    %247 = math.tanh %246 : vector<4x32xf32>
    %248 = arith.subf %247, %219 : vector<4x32xf32>
    %249 = arith.mulf %243, %248 : vector<4x32xf32>
    %250 = arith.addf %219, %249 : vector<4x32xf32>
    %c7_123 = arith.constant 7 : index
    %c0_124 = arith.constant 0 : index
    %c0_125 = arith.constant 0 : index
    %251 = vector.load %arg7[%c7_123, %c0_124, %c0_125] : memref<8x4x32xf32, #tpu.memory_space<vmem>>, vector<1x4x32xf32>
    %252 = vector.shape_cast %251 : vector<1x4x32xf32> to vector<4x32xf32>
    %253 = vector.shape_cast %250 : vector<4x32xf32> to vector<1x4x32xf32>
    tpu.vector_store %arg7[%c7_123, %c0_124, %c0_125], %253 {strides = array<i32>} : memref<8x4x32xf32, #tpu.memory_space<vmem>>, vector<1x4x32xf32>,
    %c0_126 = arith.constant 0 : index
    %c0_127 = arith.constant 0 : index
    %254 = vector.load %arg9[%c0_126, %c0_127] : memref<4x32xf32, #tpu.memory_space<vmem>>, vector<4x32xf32>
    tpu.vector_store %arg9[%c0_126, %c0_127], %250 {strides = array<i32>} : memref<4x32xf32, #tpu.memory_space<vmem>>, vector<4x32xf32>,
    %c0_i32_128 = arith.constant 0 : i32
    %255 = arith.cmpi eq, %arg0, %c0_i32_128 : i32
    %256 = arith.extui %255 : i1 to i32
    %c0_i32_129 = arith.constant 0 : i32
    %257 = arith.cmpi ne, %256, %c0_i32_129 : i32
    scf.if %257 {
      %c0_130 = arith.constant 0 : index
      %c0_131 = arith.constant 0 : index
      %258 = vector.load %arg8[%c0_130, %c0_131] : memref<4x32xf32, #tpu.memory_space<vmem>>, vector<4x32xf32>
      tpu.vector_store %arg8[%c0_130, %c0_131], %250 {strides = array<i32>} : memref<4x32xf32, #tpu.memory_space<vmem>>, vector<4x32xf32>,
    } else {
    }
    return
  }
  func.func @transform_0(%arg0: i32) -> (i32, i32, i32) {
    %c0_i32 = arith.constant 0 : i32
    %c0_i32_0 = arith.constant 0 : i32
    %c0_i32_1 = arith.constant 0 : i32
    return %arg0, %c0_i32, %c0_i32_0 : i32, i32, i32
  }
  func.func @transform_1(%arg0: i32) -> (i32, i32, i32) {
    %c0_i32 = arith.constant 0 : i32
    %c0_i32_0 = arith.constant 0 : i32
    %c0_i32_1 = arith.constant 0 : i32
    return %arg0, %c0_i32, %c0_i32_0 : i32, i32, i32
  }
  func.func @transform_2(%arg0: i32) -> (i32, i32, i32) {
    %c0_i32 = arith.constant 0 : i32
    %c0_i32_0 = arith.constant 0 : i32
    %c0_i32_1 = arith.constant 0 : i32
    return %arg0, %c0_i32, %c0_i32_0 : i32, i32, i32
  }
  func.func @transform_3(%arg0: i32) -> (i32, i32) {
    %c0_i32 = arith.constant 0 : i32
    %c0_i32_0 = arith.constant 0 : i32
    %c0_i32_1 = arith.constant 0 : i32
    return %c0_i32, %c0_i32_0 : i32, i32
  }
  func.func @transform_4(%arg0: i32) -> (i32, i32) {
    %c0_i32 = arith.constant 0 : i32
    %c0_i32_0 = arith.constant 0 : i32
    %c0_i32_1 = arith.constant 0 : i32
    return %c0_i32, %c0_i32_0 : i32, i32
  }
  func.func @transform_5(%arg0: i32) -> (i32, i32) {
    %c0_i32 = arith.constant 0 : i32
    %c0_i32_0 = arith.constant 0 : i32
    %c0_i32_1 = arith.constant 0 : i32
    return %c0_i32, %c0_i32_0 : i32, i32
  }
  func.func @transform_6(%arg0: i32) -> (i32, i32, i32) {
    %c0_i32 = arith.constant 0 : i32
    %c0_i32_0 = arith.constant 0 : i32
    %c0_i32_1 = arith.constant 0 : i32
    return %arg0, %c0_i32, %c0_i32_0 : i32, i32, i32
  }
  func.func @transform_7(%arg0: i32) -> (i32, i32) {
    %c0_i32 = arith.constant 0 : i32
    %c0_i32_0 = arith.constant 0 : i32
    %c0_i32_1 = arith.constant 0 : i32
    return %c0_i32, %c0_i32_0 : i32, i32
  }
}

</mosaic_0001>

<bundles_post_ra>
// kernel: tpu_custom_call.1
= control target key start
LH: loop header
LB: loop body
LE: loop exit
PB: predicated region body
PF: predicated region fallthrough
CT: control target
= control target key end

     0   :  { %13 = vsyncpa [#allocation4], 0  ;;  %s2416_s0 = inlined_call_operand.hbm [shape: f32[8,4,32], index: 0, kind: input, shape index: {}]   ;;  %s2417_s1 = inlined_call_operand.hbm [shape: f32[8,4,32], index: 1, kind: input, shape index: {}]   ;;  %s2418_s2 = inlined_call_operand.hbm [shape: f32[8,4,32], index: 2, kind: input, shape index: {}]   ;;  %s2419_s3 = inlined_call_operand.vmem [shape: f32[4,32], index: 3, kind: input, shape index: {}]   ;;  %s2420_s4 = inlined_call_operand.hbm [shape: f32[32,64], index: 4, kind: input, shape index: {}]   ;;  %s2421_s5 = inlined_call_operand.hbm [shape: f32[32,32], index: 5, kind: input, shape index: {}]   ;;  %s2422_s6 = inlined_call_operand.hbm [shape: f32[8,4,32], index: 6, kind: output, shape index: {0}]   ;;  %s2423_s7 = inlined_call_operand.hbm [shape: f32[4,32], index: 7, kind: output, shape index: {1}]  }
   0x1   :  { %14 = vsyncpa [#allocation7], 0 }
   0x2   :  { %15 = vsyncpa [#allocation10], 0 }
   0x3   :  { %16 = vsyncpa [#allocation5], 0 }
   0x4   :  { %17 = vsyncpa [#allocation14], 0  ;;  %s2103_s24 = smov [#allocation6]   ;;  %s2104_s26 = smov [#allocation9]  }
   0x5   :  { %s35_s25 = sshll.u32 %s2103_s24, 4  ;;  %s61_s27 = sshll.u32 %s2104_s26, 4  ;;  %s36_s25 = int_to_ptr.vmem [resolvable:$true] %s35_s25  ;;  %s62_s27 = int_to_ptr.vmem [resolvable:$true] %s61_s27 }
   0x6   :  { %s1961_s28 = scalar_lea.vmem %s36_s25, 512  ;;  %p1966_p1 = scmp.lt.s32.totalorder %s36_s25, %s36_s25 }
   0x7   :  { %p1962_p0 = scmp.ne.s32.totalorder %s36_s25, %s1961_s28  ;;  %p1967_p2 = scmp.lt.s32.totalorder %s1961_s28, %s1961_s28 }
   0x9   :  { %p1968_p3 = por %p1967_p2, %p1966_p1 }
   0xb   :  { %p1969_p4 = pnand %p1968_p3, %p1962_p0 }
   0xd   :  { %1972 = shalt.err (!%p1969_p4)
}
   0xe   :  { %s2105_s29 = smov 64   ;;  %s2106_s30 = smov 4  }
   0xf   :  { %41 = dma.hbm_to_vmem [thread:$0]  %s2417_s1, 512, %s36_s25, [#allocation7], %s2105_s29, %s2105_s29, %s2106_s30  }
  0x10   :  { %s1981_s10 = scalar_lea.vmem %s62_s27, 512  ;;  %p1986_p6 = scmp.lt.s32.totalorder %s62_s27, %s62_s27 }
  0x11   :  { %p1982_p5 = scmp.ne.s32.totalorder %s62_s27, %s1981_s10  ;;  %p1987_p7 = scmp.lt.s32.totalorder %s1981_s10, %s1981_s10 }
  0x13   :  { %p1988_p8 = por %p1987_p7, %p1986_p6 }
  0x15   :  { %p1989_p9 = pnand %p1988_p8, %p1982_p5 }
  0x17   :  { %1992 = shalt.err (!%p1989_p9)
}
  0x18   :  { %s2107_s11 = smov 128   ;;  %s2108_s12 = smov 8  }
  0x19   :  { %67 = dma.hbm_to_vmem [thread:$0]  %s2420_s4, 512, %s62_s27, [#allocation10], %s2107_s11, %s2107_s11, %s2108_s12  }
  0x1a   :  { %s2109_s15 = smov [#allocation3]   ;;  %s2110_s17 = smov [#allocation8]  }
  0x1b   :  { %s23_s16 = sshll.u32 %s2109_s15, 4  ;;  %s47_s1 = sshll.u32 %s2110_s17, 4  ;;  %s24_s16 = int_to_ptr.vmem [resolvable:$true] %s23_s16  ;;  %s48_s1 = int_to_ptr.vmem [resolvable:$true] %s47_s1 }
  0x1c   :  { %s2001_s18 = scalar_lea.vmem %s24_s16, 512  ;;  %p2006_p11 = scmp.lt.s32.totalorder %s24_s16, %s24_s16 }
  0x1d   :  { %p2002_p10 = scmp.ne.s32.totalorder %s24_s16, %s2001_s18  ;;  %p2007_p12 = scmp.lt.s32.totalorder %s2001_s18, %s2001_s18 }
  0x1f   :  { %p2008_p13 = por %p2007_p12, %p2006_p11 }
  0x21   :  { %p2009_p0 = pnand %p2008_p13, %p2002_p10 }
  0x23   :  { %2012 = shalt.err (!%p2009_p0)
}
  0x24   :  { %29 = dma.hbm_to_vmem [thread:$0]  %s2416_s0, 512, %s24_s16, [#allocation4], %s2105_s29, %s2105_s29, %s2106_s30  }
  0x25   :  { %s2021_s4 = scalar_lea.vmem %s48_s1, 512  ;;  %p2026_p2 = scmp.lt.s32.totalorder %s48_s1, %s48_s1 }
  0x26   :  { %p2022_p1 = scmp.ne.s32.totalorder %s48_s1, %s2021_s4  ;;  %p2027_p3 = scmp.lt.s32.totalorder %s2021_s4, %s2021_s4 }
  0x28   :  { %p2028_p4 = por %p2027_p3, %p2026_p2 }
  0x2a   :  { %p2029_p5 = pnand %p2028_p4, %p2022_p1 }
  0x2c   :  { %2032 = shalt.err (!%p2029_p5)
}
  0x2d   :  { %53 = dma.hbm_to_vmem [thread:$0]  %s2418_s2, 512, %s48_s1, [#allocation7], %s2105_s29, %s2105_s29, %s2106_s30  }
  0x2e   :  { %s2111_s23 = smov [#allocation11]  }
  0x2f   :  { %s73_s24 = sshll.u32 %s2111_s23, 4  ;;  %s74_s24 = int_to_ptr.vmem [resolvable:$true] %s73_s24 }
  0x30   :  { %s2041_s25 = scalar_lea.vmem %s74_s24, 512  ;;  %p2046_p7 = scmp.lt.s32.totalorder %s74_s24, %s74_s24 }
  0x31   :  { %p2042_p6 = scmp.ne.s32.totalorder %s74_s24, %s2041_s25  ;;  %p2047_p8 = scmp.lt.s32.totalorder %s2041_s25, %s2041_s25 }
  0x33   :  { %p2048_p9 = por %p2047_p8, %p2046_p7 }
  0x35   :  { %p2049_p10 = pnand %p2048_p9, %p2042_p6 }
  0x37   :  { %2052 = shalt.err (!%p2049_p10)
}
  0x38   :  { %79 = dma.hbm_to_vmem [thread:$0]  %s2421_s5, 512, %s74_s24, [#allocation10], %s2107_s11, %s2107_s11, %s2108_s12  }
  0x39   :  { %2093 = dma.done.wait [#allocation4], 512  }
  0x3a   :  { %2094 = vsyncadd [#allocation4], 4294966784 }
  0x3b   :  { %2095 = dma.done.wait [#allocation7], 1024  }
  0x3c   :  { %2096 = vsyncadd [#allocation7], 4294966272 }
  0x3d   :  { %2097 = dma.done.wait [#allocation10], 1024  }
  0x3e   :  { %2098 = vsyncadd [#allocation10], 4294966272  ;;  %v2112_v0 = vmov 0.0   ;;  %vm2113_vm0 = vmmov 0   ;;  %vm100_vm1 = vcmask 257024   ;;  %v2193_v1 = vld [vmem:[#allocation9 + $0x18] sm:$0xff] }
  0x3f   :  { %1683 = vmatprep.subr.mxu0 %v2112_v0  ;;  %1691 = vmatprep.mubr.msk.f32.mxu0 %vm2113_vm0, %v2112_v0  ;;  %v2195_v2 = vld [vmem:[#allocation9 + $0x10] sm:$0xff]  ;;  %v99_v3 = vld [vmem:[%s2419_s3] sm:$0xf]  ;;  %v2202_v4 = vld [vmem:[#allocation9 + $0x8] sm:$0xff]  ;;  %vm114_vm2 = vcmask 261120   ;;  %s2114_s3 = smov 96  }
  0x40   :  { %1694 = vmatprep.subr.mxu1 %v2112_v0  ;;  %1702 = vmatprep.mubr.msk.f32.mxu1 %vm2113_vm0, %v2112_v0  ;;  %101 = vst.msk [vmem:[#allocation2] sm:$0xf] %vm100_vm1, %v99_v3  ;;  %v2207_v5 = vld [vmem:[#allocation9] sm:$0xff]  ;;  %v2227_v7 = vld [vmem:[#allocation11 + $0x18] sm:$0xff]  ;;  %v2229_v8 = vld [vmem:[#allocation11 + $0x10] sm:$0xff]  ;;  %s2115_s27 = smov [#allocation12]  }
  0x41   :  { %1684 = vmatpush3.msra.mxu0 %v2193_v1  ;;  %1695 = vmatpush3.msra.mxu1 %v2227_v7  ;;  %v2233_v9 = vld [vmem:[#allocation11 + $0x8] sm:$0xff]  ;;  %v2237_v10 = vld [vmem:[#allocation11] sm:$0xff]  ;;  %s1543_s28 = sshll.u32 %s2115_s27, 4  ;;  %s2116_s8 = smov [#allocation13]   ;;  %s1544_s28 = int_to_ptr.vmem [resolvable:$true] %s1543_s28 }
  0x42   :  { %1685 = vmatprep.subr.mxu0 %v2112_v0  ;;  %1696 = vmatprep.subr.mxu1 %v2112_v0  ;;  %v111_v11 = vld [vmem:[#allocation3] sm:$0xf]  ;;  %v288_v35 = vld [vmem:[#allocation3 + $0x4] sm:$0xf]  ;;  %v466_v59 = vld [vmem:[#allocation3 + $0x8] sm:$0xf]  ;;  %p2058_p12 = scmp.lt.s32.totalorder %s1544_s28, %s1544_s28 }
  0x43   :  { %1686 = vmatpush3.msra.mxu0 %v2195_v2  ;;  %1697 = vmatpush3.msra.mxu1 %v2229_v8  ;;  %v112_v20 = vld [vmem:[#allocation6] sm:$0xf]  ;;  %v290_v44 = vld [vmem:[#allocation6 + $0x4] sm:$0xf]  ;;  %s1556_s9 = sshll.u32 %s2116_s8, 4  ;;  %s2053_s10 = scalar_lea.vmem %s1544_s28, 512  ;;  %s1557_s9 = int_to_ptr.vmem [resolvable:$true] %s1556_s9 }
  0x44   :  { %1687 = vmatprep.subr.mxu0 %v2112_v0  ;;  %1698 = vmatprep.subr.mxu1 %v2112_v0  ;;  %v113_v25 = vld [vmem:[#allocation8] sm:$0xf]  ;;  %v292_v49 = vld [vmem:[#allocation8 + $0x4] sm:$0xf]  ;;  %p2054_p11 = scmp.ne.s32.totalorder %s1544_s28, %s2053_s10  ;;  %p2059_p13 = scmp.lt.s32.totalorder %s2053_s10, %s2053_s10 }
  0x45   :  { %1688 = vmatpush3.msra.mxu0 %v2202_v4  ;;  %1699 = vmatpush3.msra.mxu1 %v2233_v9 }
  0x46   :  { %1689 = vmatprep.subr.mxu0 %v2112_v0  ;;  %1700 = vmatprep.subr.mxu1 %v2112_v0  ;;  %p2060_p0 = por %p2059_p13, %p2058_p12 }
  0x47   :  { %1690 = vmatpush3.msra.mxu0 %v2207_v5  ;;  %v2213_v6 = vld [vmem:[#allocation2] sm:$0xf]  ;;  %1701 = vmatpush3.msra.mxu1 %v2237_v10 }
  0x48   :  { %1705 = vmatprep.subr.mxu0 %v2112_v0  ;;  %1692 = vmatmul.mubr.msk.f32.vlgmr.msra.gmra.mxu0 %vm114_vm2, %v2213_v6  ;;  %p2061_p1 = pnand %p2060_p0, %p2054_p11 }
  0x49   :  { %1706 = vmatpush3.msra.mxu0 %v2193_v1  ;;  %1713 = vmatprep.mubr.msk.f32.mxu0 %vm2113_vm0, %v2112_v0 }
  0x4a   :  { %1707 = vmatprep.subr.mxu0 %v2112_v0  ;;  %1716 = vmatprep.subr.mxu1 %v2112_v0 }
  0x4b   :  { %1708 = vmatpush3.msra.mxu0 %v2195_v2 }
  0x4c   :  { %1709 = vmatprep.subr.mxu0 %v2112_v0 }
  0x4d   :  { %1710 = vmatpush3.msra.mxu0 %v2202_v4 }
  0x4e   :  { %1711 = vmatprep.subr.mxu0 %v2112_v0 }
  0x4f   :  { %1712 = vmatpush3.msra.mxu0 %v2207_v5 }
  0x50   :  { %1727 = vmatprep.subr.mxu0 %v2112_v0 }
 0x108   :  { %v184_v12 = vpop.f32.mrf.mxu0 }
 0x109   :  { %v188_v13 = vadd.f32 %v184_v12, %v111_v11  ;;  %196 = vrot.lane.b32.xlu0 %v184_v12, %s2114_s3 }
 0x10a   :  { %v1693_v14 = vpop.f32.mrf.mxu0 }
 0x10b   :  { %v1572_v15 = vmul.f32 -1.442695, %v188_v13  ;;  %v468_v13 = vld [vmem:[#allocation6 + $0x8] sm:$0xf] }
 0x10d   :  { %1873 = vpow2.f32 %v1572_v15 }
 0x11a   :  { %v1874_v16 = vpop.eup %1873 }
 0x11b   :  { %v192_v17 = vadd.f32 1.0, %v1874_v16 }
 0x11d   :  { %1875 = vrcp.f32 %v192_v17 }
 0x12a   :  { %v1876_v18 = vpop.eup %1875 }
 0x12b   :  { %v206_v19 = vmul.f32 %v1876_v18, %v2213_v6  ;;  %v470_v18 = vld [vmem:[#allocation8 + $0x8] sm:$0xf] }
 0x12d   :  { %1703 = vmatmul.mubr.msk.f32.vlgmr.msra.gmra.mxu1 %vm114_vm2, %v206_v19 }
 0x12e   :  { %1717 = vmatpush3.msra.mxu1 %v2227_v7  ;;  %1724 = vmatprep.mubr.msk.f32.mxu1 %vm2113_vm0, %v2112_v0 }
 0x12f   :  { %1718 = vmatprep.subr.mxu1 %v2112_v0 }
 0x130   :  { %1719 = vmatpush3.msra.mxu1 %v2229_v8 }
 0x131   :  { %1720 = vmatprep.subr.mxu1 %v2112_v0 }
 0x132   :  { %1721 = vmatpush3.msra.mxu1 %v2233_v9 }
 0x133   :  { %1722 = vmatprep.subr.mxu1 %v2112_v0 }
 0x134   :  { %1723 = vmatpush3.msra.mxu1 %v2237_v10 }
 0x135   :  { %1738 = vmatprep.subr.mxu1 %v2112_v0 }
 0x17b   :  { %v197_v21 = vpop.permute.xlu0 %196 }
 0x17c   :  { %v199_v22 = vadd.f32 %v197_v21, %v112_v20 }
 0x17e   :  { %v1573_v23 = vmul.f32 -1.442695, %v199_v22 }
 0x180   :  { %1877 = vpow2.f32 %v1573_v23 }
 0x18d   :  { %v1878_v24 = vpop.eup %1877 }
 0x18e   :  { %v203_v27 = vadd.f32 1.0, %v1878_v24 }
 0x1ed   :  { %v276_v26 = vpop.f32.mrf.mxu1 }
 0x1ee   :  { %v280_v28 = vadd.f32 %v276_v26, %v113_v25 }
 0x1ef   :  { %v1704_v29 = vpop.f32.mrf.mxu1 }
 0x1f0   :  { %1879 = vtanh.f32 %v280_v28  ;;  %v644_v28 = vld [vmem:[#allocation3 + $0xc] sm:$0xf] }
 0x1f1   :  { %1881 = vrcp.f32 %v203_v27 }
 0x1fd   :  { %v1880_v30 = vpop.eup %1879 }
 0x1fe   :  { %v282_v31 = vsub.f32 %v1880_v30, %v2213_v6  ;;  %v1882_v32 = vpop.eup %1881 }
 0x200   :  { %v283_v33 = vmul.f32 %v1882_v32, %v282_v31 }
 0x202   :  { %v284_v34 = vadd.f32 %v283_v33, %v2213_v6 }
 0x204   :  { %1714 = vmatmul.mubr.msk.f32.vlgmr.msra.gmra.mxu0 %vm114_vm2, %v284_v34  ;;  %286 = vst.msk [vmem:[#allocation12] sm:$0xf] %vm100_vm1, %v284_v34 }
 0x205   :  { %1728 = vmatpush3.msra.mxu0 %v2193_v1  ;;  %1735 = vmatprep.mubr.msk.f32.mxu0 %vm2113_vm0, %v2112_v0 }
 0x206   :  { %1729 = vmatprep.subr.mxu0 %v2112_v0 }
 0x207   :  { %1730 = vmatpush3.msra.mxu0 %v2195_v2 }
 0x208   :  { %1731 = vmatprep.subr.mxu0 %v2112_v0 }
 0x209   :  { %1732 = vmatpush3.msra.mxu0 %v2202_v4 }
 0x20a   :  { %1733 = vmatprep.subr.mxu0 %v2112_v0 }
 0x20b   :  { %1734 = vmatpush3.msra.mxu0 %v2207_v5 }
 0x20c   :  { %1749 = vmatprep.subr.mxu0 %v2112_v0 }
 0x2c4   :  { %v362_v36 = vpop.f32.mrf.mxu0 }
 0x2c5   :  { %v366_v37 = vadd.f32 %v362_v36, %v288_v35  ;;  %374 = vrot.lane.b32.xlu0 %v362_v36, %s2114_s3 }
 0x2c6   :  { %v1715_v38 = vpop.f32.mrf.mxu0 }
 0x2c7   :  { %v1576_v39 = vmul.f32 -1.442695, %v366_v37  ;;  %v646_v37 = vld [vmem:[#allocation6 + $0xc] sm:$0xf] }
 0x2c9   :  { %1883 = vpow2.f32 %v1576_v39 }
 0x2d6   :  { %v1884_v40 = vpop.eup %1883 }
 0x2d7   :  { %v370_v41 = vadd.f32 1.0, %v1884_v40 }
 0x2d9   :  { %1885 = vrcp.f32 %v370_v41 }
 0x2e6   :  { %v1886_v42 = vpop.eup %1885 }
 0x2e7   :  { %v384_v43 = vmul.f32 %v1886_v42, %v284_v34  ;;  %v648_v42 = vld [vmem:[#allocation8 + $0xc] sm:$0xf] }
 0x2e9   :  { %1725 = vmatmul.mubr.msk.f32.vlgmr.msra.gmra.mxu1 %vm114_vm2, %v384_v43 }
 0x2ea   :  { %1739 = vmatpush3.msra.mxu1 %v2227_v7  ;;  %1746 = vmatprep.mubr.msk.f32.mxu1 %vm2113_vm0, %v2112_v0 }
 0x2eb   :  { %1740 = vmatprep.subr.mxu1 %v2112_v0 }
 0x2ec   :  { %1741 = vmatpush3.msra.mxu1 %v2229_v8 }
 0x2ed   :  { %1742 = vmatprep.subr.mxu1 %v2112_v0 }
 0x2ee   :  { %1743 = vmatpush3.msra.mxu1 %v2233_v9 }
 0x2ef   :  { %1744 = vmatprep.subr.mxu1 %v2112_v0 }
 0x2f0   :  { %1745 = vmatpush3.msra.mxu1 %v2237_v10 }
 0x2f1   :  { %1760 = vmatprep.subr.mxu1 %v2112_v0 }
 0x337   :  { %v375_v45 = vpop.permute.xlu0 %374 }
 0x338   :  { %v377_v46 = vadd.f32 %v375_v45, %v290_v44 }
 0x33a   :  { %v1577_v47 = vmul.f32 -1.442695, %v377_v46 }
 0x33c   :  { %1887 = vpow2.f32 %v1577_v47 }
 0x349   :  { %v1888_v48 = vpop.eup %1887 }
 0x34a   :  { %v381_v51 = vadd.f32 1.0, %v1888_v48 }
 0x3a9   :  { %v454_v50 = vpop.f32.mrf.mxu1 }
 0x3aa   :  { %v458_v52 = vadd.f32 %v454_v50, %v292_v49 }
 0x3ab   :  { %v1726_v53 = vpop.f32.mrf.mxu1 }
 0x3ac   :  { %1889 = vtanh.f32 %v458_v52  ;;  %v822_v52 = vld [vmem:[#allocation3 + $0x10] sm:$0xf] }
 0x3ad   :  { %1891 = vrcp.f32 %v381_v51 }
 0x3b9   :  { %v1890_v54 = vpop.eup %1889 }
 0x3ba   :  { %v460_v55 = vsub.f32 %v1890_v54, %v284_v34  ;;  %v1892_v56 = vpop.eup %1891 }
 0x3bc   :  { %v461_v57 = vmul.f32 %v1892_v56, %v460_v55 }
 0x3be   :  { %v462_v58 = vadd.f32 %v461_v57, %v284_v34 }
 0x3c0   :  { %1736 = vmatmul.mubr.msk.f32.vlgmr.msra.gmra.mxu0 %vm114_vm2, %v462_v58  ;;  %464 = vst.msk [vmem:[#allocation12 + $0x4] sm:$0xf] %vm100_vm1, %v462_v58 }
 0x3c1   :  { %1750 = vmatpush3.msra.mxu0 %v2193_v1  ;;  %1757 = vmatprep.mubr.msk.f32.mxu0 %vm2113_vm0, %v2112_v0 }
 0x3c2   :  { %1751 = vmatprep.subr.mxu0 %v2112_v0 }
 0x3c3   :  { %1752 = vmatpush3.msra.mxu0 %v2195_v2 }
 0x3c4   :  { %1753 = vmatprep.subr.mxu0 %v2112_v0 }
 0x3c5   :  { %1754 = vmatpush3.msra.mxu0 %v2202_v4 }
 0x3c6   :  { %1755 = vmatprep.subr.mxu0 %v2112_v0 }
 0x3c7   :  { %1756 = vmatpush3.msra.mxu0 %v2207_v5 }
 0x3c8   :  { %1771 = vmatprep.subr.mxu0 %v2112_v0 }
 0x480   :  { %v540_v60 = vpop.f32.mrf.mxu0 }
 0x481   :  { %v544_v61 = vadd.f32 %v540_v60, %v466_v59  ;;  %552 = vrot.lane.b32.xlu1 %v540_v60, %s2114_s3 }
 0x482   :  { %v1737_v62 = vpop.f32.mrf.mxu0 }
 0x483   :  { %v1580_v63 = vmul.f32 -1.442695, %v544_v61  ;;  %v824_v61 = vld [vmem:[#allocation6 + $0x10] sm:$0xf] }
 0x485   :  { %1893 = vpow2.f32 %v1580_v63 }
 0x492   :  { %v1894_v3 = vpop.eup %1893 }
 0x493   :  { %v548_v6 = vadd.f32 1.0, %v1894_v3 }
 0x495   :  { %1895 = vrcp.f32 %v548_v6 }
 0x4a2   :  { %v1896_v11 = vpop.eup %1895 }
 0x4a3   :  { %v562_v12 = vmul.f32 %v1896_v11, %v462_v58  ;;  %v826_v11 = vld [vmem:[#allocation8 + $0x10] sm:$0xf] }
 0x4a5   :  { %1747 = vmatmul.mubr.msk.f32.vlgmr.msra.gmra.mxu1 %vm114_vm2, %v562_v12 }
 0x4a6   :  { %1761 = vmatpush3.msra.mxu1 %v2227_v7  ;;  %1768 = vmatprep.mubr.msk.f32.mxu1 %vm2113_vm0, %v2112_v0 }
 0x4a7   :  { %1762 = vmatprep.subr.mxu1 %v2112_v0 }
 0x4a8   :  { %1763 = vmatpush3.msra.mxu1 %v2229_v8 }
 0x4a9   :  { %1764 = vmatprep.subr.mxu1 %v2112_v0 }
 0x4aa   :  { %1765 = vmatpush3.msra.mxu1 %v2233_v9 }
 0x4ab   :  { %1766 = vmatprep.subr.mxu1 %v2112_v0 }
 0x4ac   :  { %1767 = vmatpush3.msra.mxu1 %v2237_v10 }
 0x4ad   :  { %1782 = vmatprep.subr.mxu1 %v2112_v0 }
 0x4f3   :  { %v553_v14 = vpop.permute.xlu1 %552 }
 0x4f4   :  { %v555_v15 = vadd.f32 %v553_v14, %v468_v13 }
 0x4f6   :  { %v1581_v16 = vmul.f32 -1.442695, %v555_v15 }
 0x4f8   :  { %1897 = vpow2.f32 %v1581_v16 }
 0x505   :  { %v1898_v17 = vpop.eup %1897 }
 0x506   :  { %v559_v20 = vadd.f32 1.0, %v1898_v17 }
 0x565   :  { %v632_v19 = vpop.f32.mrf.mxu1 }
 0x566   :  { %v636_v21 = vadd.f32 %v632_v19, %v470_v18 }
 0x567   :  { %v1748_v22 = vpop.f32.mrf.mxu1 }
 0x568   :  { %1899 = vtanh.f32 %v636_v21  ;;  %v1000_v21 = vld [vmem:[#allocation3 + $0x14] sm:$0xf] }
 0x569   :  { %1901 = vrcp.f32 %v559_v20 }
 0x575   :  { %v1900_v23 = vpop.eup %1899 }
 0x576   :  { %v638_v24 = vsub.f32 %v1900_v23, %v462_v58  ;;  %v1902_v25 = vpop.eup %1901 }
 0x578   :  { %v639_v26 = vmul.f32 %v1902_v25, %v638_v24 }
 0x57a   :  { %v640_v27 = vadd.f32 %v639_v26, %v462_v58 }
 0x57c   :  { %1758 = vmatmul.mubr.msk.f32.vlgmr.msra.gmra.mxu0 %vm114_vm2, %v640_v27  ;;  %642 = vst.msk [vmem:[#allocation12 + $0x8] sm:$0xf] %vm100_vm1, %v640_v27 }
 0x57d   :  { %1772 = vmatpush3.msra.mxu0 %v2193_v1  ;;  %1779 = vmatprep.mubr.msk.f32.mxu0 %vm2113_vm0, %v2112_v0 }
 0x57e   :  { %1773 = vmatprep.subr.mxu0 %v2112_v0 }
 0x57f   :  { %1774 = vmatpush3.msra.mxu0 %v2195_v2 }
 0x580   :  { %1775 = vmatprep.subr.mxu0 %v2112_v0 }
 0x581   :  { %1776 = vmatpush3.msra.mxu0 %v2202_v4 }
 0x582   :  { %1777 = vmatprep.subr.mxu0 %v2112_v0 }
 0x583   :  { %1778 = vmatpush3.msra.mxu0 %v2207_v5 }
 0x584   :  { %1793 = vmatprep.subr.mxu0 %v2112_v0 }
 0x63c   :  { %v718_v29 = vpop.f32.mrf.mxu0 }
 0x63d   :  { %v722_v30 = vadd.f32 %v718_v29, %v644_v28  ;;  %730 = vrot.lane.b32.xlu1 %v718_v29, %s2114_s3 }
 0x63e   :  { %v1759_v31 = vpop.f32.mrf.mxu0 }
 0x63f   :  { %v1584_v32 = vmul.f32 -1.442695, %v722_v30  ;;  %v1002_v30 = vld [vmem:[#allocation6 + $0x14] sm:$0xf] }
 0x641   :  { %1903 = vpow2.f32 %v1584_v32 }
 0x64e   :  { %v1904_v33 = vpop.eup %1903 }
 0x64f   :  { %v726_v34 = vadd.f32 1.0, %v1904_v33 }
 0x651   :  { %1905 = vrcp.f32 %v726_v34 }
 0x65e   :  { %v1906_v35 = vpop.eup %1905 }
 0x65f   :  { %v740_v36 = vmul.f32 %v1906_v35, %v640_v27  ;;  %v1004_v35 = vld [vmem:[#allocation8 + $0x14] sm:$0xf] }
 0x661   :  { %1769 = vmatmul.mubr.msk.f32.vlgmr.msra.gmra.mxu1 %vm114_vm2, %v740_v36 }
 0x662   :  { %1783 = vmatpush3.msra.mxu1 %v2227_v7  ;;  %1790 = vmatprep.mubr.msk.f32.mxu1 %vm2113_vm0, %v2112_v0 }
 0x663   :  { %1784 = vmatprep.subr.mxu1 %v2112_v0 }
 0x664   :  { %1785 = vmatpush3.msra.mxu1 %v2229_v8 }
 0x665   :  { %1786 = vmatprep.subr.mxu1 %v2112_v0 }
 0x666   :  { %1787 = vmatpush3.msra.mxu1 %v2233_v9 }
 0x667   :  { %1788 = vmatprep.subr.mxu1 %v2112_v0 }
 0x668   :  { %1789 = vmatpush3.msra.mxu1 %v2237_v10 }
 0x669   :  { %1804 = vmatprep.subr.mxu1 %v2112_v0 }
 0x6af   :  { %v731_v38 = vpop.permute.xlu1 %730 }
 0x6b0   :  { %v733_v39 = vadd.f32 %v731_v38, %v646_v37 }
 0x6b2   :  { %v1585_v40 = vmul.f32 -1.442695, %v733_v39 }
 0x6b4   :  { %1907 = vpow2.f32 %v1585_v40 }
 0x6c1   :  { %v1908_v41 = vpop.eup %1907 }
 0x6c2   :  { %v737_v44 = vadd.f32 1.0, %v1908_v41 }
 0x721   :  { %v810_v43 = vpop.f32.mrf.mxu1 }
 0x722   :  { %v814_v45 = vadd.f32 %v810_v43, %v648_v42 }
 0x723   :  { %v1770_v46 = vpop.f32.mrf.mxu1 }
 0x724   :  { %1909 = vtanh.f32 %v814_v45  ;;  %v1178_v45 = vld [vmem:[#allocation3 + $0x18] sm:$0xf] }
 0x725   :  { %1911 = vrcp.f32 %v737_v44 }
 0x731   :  { %v1910_v47 = vpop.eup %1909 }
 0x732   :  { %v816_v48 = vsub.f32 %v1910_v47, %v640_v27  ;;  %v1912_v49 = vpop.eup %1911 }
 0x734   :  { %v817_v50 = vmul.f32 %v1912_v49, %v816_v48 }
 0x736   :  { %v818_v51 = vadd.f32 %v817_v50, %v640_v27 }
 0x738   :  { %1780 = vmatmul.mubr.msk.f32.vlgmr.msra.gmra.mxu0 %vm114_vm2, %v818_v51  ;;  %820 = vst.msk [vmem:[#allocation12 + $0xc] sm:$0xf] %vm100_vm1, %v818_v51 }
 0x739   :  { %1794 = vmatpush3.msra.mxu0 %v2193_v1  ;;  %1801 = vmatprep.mubr.msk.f32.mxu0 %vm2113_vm0, %v2112_v0 }
 0x73a   :  { %1795 = vmatprep.subr.mxu0 %v2112_v0 }
 0x73b   :  { %1796 = vmatpush3.msra.mxu0 %v2195_v2 }
 0x73c   :  { %1797 = vmatprep.subr.mxu0 %v2112_v0 }
 0x73d   :  { %1798 = vmatpush3.msra.mxu0 %v2202_v4 }
 0x73e   :  { %1799 = vmatprep.subr.mxu0 %v2112_v0 }
 0x73f   :  { %1800 = vmatpush3.msra.mxu0 %v2207_v5 }
 0x740   :  { %1815 = vmatprep.subr.mxu0 %v2112_v0 }
 0x7f8   :  { %v896_v53 = vpop.f32.mrf.mxu0 }
 0x7f9   :  { %v900_v54 = vadd.f32 %v896_v53, %v822_v52  ;;  %908 = vrot.lane.b32.xlu0 %v896_v53, %s2114_s3 }
 0x7fa   :  { %v1781_v55 = vpop.f32.mrf.mxu0 }
 0x7fb   :  { %v1588_v56 = vmul.f32 -1.442695, %v900_v54  ;;  %v1182_v54 = vld [vmem:[#allocation8 + $0x18] sm:$0xf] }
 0x7fd   :  { %1913 = vpow2.f32 %v1588_v56 }
 0x80a   :  { %v1914_v57 = vpop.eup %1913 }
 0x80b   :  { %v904_v58 = vadd.f32 1.0, %v1914_v57 }
 0x80d   :  { %1915 = vrcp.f32 %v904_v58 }
 0x81a   :  { %v1916_v59 = vpop.eup %1915 }
 0x81b   :  { %v918_v60 = vmul.f32 %v1916_v59, %v818_v51 }
 0x81d   :  { %1791 = vmatmul.mubr.msk.f32.vlgmr.msra.gmra.mxu1 %vm114_vm2, %v918_v60 }
 0x81e   :  { %1805 = vmatpush3.msra.mxu1 %v2227_v7  ;;  %1812 = vmatprep.mubr.msk.f32.mxu1 %vm2113_vm0, %v2112_v0 }
 0x81f   :  { %1806 = vmatprep.subr.mxu1 %v2112_v0 }
 0x820   :  { %1807 = vmatpush3.msra.mxu1 %v2229_v8 }
 0x821   :  { %1808 = vmatprep.subr.mxu1 %v2112_v0 }
 0x822   :  { %1809 = vmatpush3.msra.mxu1 %v2233_v9 }
 0x823   :  { %1810 = vmatprep.subr.mxu1 %v2112_v0 }
 0x824   :  { %1811 = vmatpush3.msra.mxu1 %v2237_v10 }
 0x825   :  { %1826 = vmatprep.subr.mxu1 %v2112_v0 }
 0x86b   :  { %v909_v62 = vpop.permute.xlu0 %908 }
 0x86c   :  { %v911_v63 = vadd.f32 %v909_v62, %v824_v61 }
 0x86e   :  { %v1589_v3 = vmul.f32 -1.442695, %v911_v63 }
 0x870   :  { %1917 = vpow2.f32 %v1589_v3 }
 0x87d   :  { %v1918_v6 = vpop.eup %1917 }
 0x87e   :  { %v915_v13 = vadd.f32 1.0, %v1918_v6 }
 0x8dd   :  { %v988_v12 = vpop.f32.mrf.mxu1 }
 0x8de   :  { %v992_v14 = vadd.f32 %v988_v12, %v826_v11 }
 0x8df   :  { %v1792_v15 = vpop.f32.mrf.mxu1 }
 0x8e0   :  { %1919 = vtanh.f32 %v992_v14  ;;  %v1358_v14 = vld [vmem:[#allocation6 + $0x1c] sm:$0xf] }
 0x8e1   :  { %1921 = vrcp.f32 %v915_v13 }
 0x8ed   :  { %v1920_v16 = vpop.eup %1919 }
 0x8ee   :  { %v994_v17 = vsub.f32 %v1920_v16, %v818_v51  ;;  %v1922_v18 = vpop.eup %1921 }
 0x8f0   :  { %v995_v19 = vmul.f32 %v1922_v18, %v994_v17 }
 0x8f2   :  { %v996_v20 = vadd.f32 %v995_v19, %v818_v51  ;;  %v1360_v19 = vld [vmem:[#allocation8 + $0x1c] sm:$0xf] }
 0x8f4   :  { %1802 = vmatmul.mubr.msk.f32.vlgmr.msra.gmra.mxu0 %vm114_vm2, %v996_v20  ;;  %998 = vst.msk [vmem:[#allocation12 + $0x10] sm:$0xf] %vm100_vm1, %v996_v20 }
 0x8f5   :  { %1816 = vmatpush3.msra.mxu0 %v2193_v1  ;;  %1823 = vmatprep.mubr.msk.f32.mxu0 %vm2113_vm0, %v2112_v0 }
 0x8f6   :  { %1817 = vmatprep.subr.mxu0 %v2112_v0 }
 0x8f7   :  { %1818 = vmatpush3.msra.mxu0 %v2195_v2 }
 0x8f8   :  { %1819 = vmatprep.subr.mxu0 %v2112_v0 }
 0x8f9   :  { %1820 = vmatpush3.msra.mxu0 %v2202_v4 }
 0x8fa   :  { %1821 = vmatprep.subr.mxu0 %v2112_v0 }
 0x8fb   :  { %1822 = vmatpush3.msra.mxu0 %v2207_v5 }
 0x8fc   :  { %1837 = vmatprep.subr.mxu0 %v2112_v0 }
 0x9b4   :  { %v1074_v22 = vpop.f32.mrf.mxu0 }
 0x9b5   :  { %v1078_v23 = vadd.f32 %v1074_v22, %v1000_v21  ;;  %1086 = vrot.lane.b32.xlu1 %v1074_v22, %s2114_s3 }
 0x9b6   :  { %v1803_v24 = vpop.f32.mrf.mxu0 }
 0x9b7   :  { %v1592_v25 = vmul.f32 -1.442695, %v1078_v23 }
 0x9b9   :  { %1923 = vpow2.f32 %v1592_v25 }
 0x9c6   :  { %v1924_v26 = vpop.eup %1923 }
 0x9c7   :  { %v1082_v27 = vadd.f32 1.0, %v1924_v26 }
 0x9c9   :  { %1925 = vrcp.f32 %v1082_v27 }
 0x9d6   :  { %v1926_v28 = vpop.eup %1925 }
 0x9d7   :  { %v1096_v29 = vmul.f32 %v1926_v28, %v996_v20 }
 0x9d9   :  { %1813 = vmatmul.mubr.msk.f32.vlgmr.msra.gmra.mxu1 %vm114_vm2, %v1096_v29 }
 0x9da   :  { %1827 = vmatpush3.msra.mxu1 %v2227_v7  ;;  %1834 = vmatprep.mubr.msk.f32.mxu1 %vm2113_vm0, %v2112_v0 }
 0x9db   :  { %1828 = vmatprep.subr.mxu1 %v2112_v0 }
 0x9dc   :  { %1829 = vmatpush3.msra.mxu1 %v2229_v8 }
 0x9dd   :  { %1830 = vmatprep.subr.mxu1 %v2112_v0 }
 0x9de   :  { %1831 = vmatpush3.msra.mxu1 %v2233_v9 }
 0x9df   :  { %1832 = vmatprep.subr.mxu1 %v2112_v0 }
 0x9e0   :  { %1833 = vmatpush3.msra.mxu1 %v2237_v10 }
 0x9e1   :  { %1848 = vmatprep.subr.mxu1 %v2112_v0 }
 0xa27   :  { %v1087_v31 = vpop.permute.xlu1 %1086 }
 0xa28   :  { %v1089_v32 = vadd.f32 %v1087_v31, %v1002_v30 }
 0xa2a   :  { %v1593_v33 = vmul.f32 -1.442695, %v1089_v32 }
 0xa2c   :  { %1927 = vpow2.f32 %v1593_v33 }
 0xa39   :  { %v1928_v34 = vpop.eup %1927 }
 0xa3a   :  { %v1093_v37 = vadd.f32 1.0, %v1928_v34 }
 0xa99   :  { %v1166_v36 = vpop.f32.mrf.mxu1 }
 0xa9a   :  { %v1170_v38 = vadd.f32 %v1166_v36, %v1004_v35 }
 0xa9b   :  { %v1814_v39 = vpop.f32.mrf.mxu1 }
 0xa9c   :  { %1929 = vtanh.f32 %v1170_v38 }
 0xa9d   :  { %1931 = vrcp.f32 %v1093_v37 }
 0xaa9   :  { %v1930_v40 = vpop.eup %1929 }
 0xaaa   :  { %v1172_v41 = vsub.f32 %v1930_v40, %v996_v20  ;;  %v1932_v42 = vpop.eup %1931 }
 0xaac   :  { %v1173_v43 = vmul.f32 %v1932_v42, %v1172_v41 }
 0xaae   :  { %v1174_v44 = vadd.f32 %v1173_v43, %v996_v20 }
 0xab0   :  { %1824 = vmatmul.mubr.msk.f32.vlgmr.msra.gmra.mxu0 %vm114_vm2, %v1174_v44  ;;  %1176 = vst.msk [vmem:[#allocation12 + $0x14] sm:$0xf] %vm100_vm1, %v1174_v44 }
 0xab1   :  { %1838 = vmatpush3.msra.mxu0 %v2193_v1  ;;  %1845 = vmatprep.mubr.msk.f32.mxu0 %vm2113_vm0, %v2112_v0 }
 0xab2   :  { %1839 = vmatprep.subr.mxu0 %v2112_v0 }
 0xab3   :  { %1840 = vmatpush3.msra.mxu0 %v2195_v2 }
 0xab4   :  { %1841 = vmatprep.subr.mxu0 %v2112_v0 }
 0xab5   :  { %1842 = vmatpush3.msra.mxu0 %v2202_v4  ;;  %v1180_v4 = vld [vmem:[#allocation6 + $0x18] sm:$0xf] }
 0xab6   :  { %1843 = vmatprep.subr.mxu0 %v2112_v0 }
 0xab7   :  { %1844 = vmatpush3.msra.mxu0 %v2207_v5 }
 0xb70   :  { %v1252_v46 = vpop.f32.mrf.mxu0 }
 0xb71   :  { %v1256_v47 = vadd.f32 %v1252_v46, %v1178_v45  ;;  %1264 = vrot.lane.b32.xlu0 %v1252_v46, %s2114_s3 }
 0xb72   :  { %v1825_v1 = vpop.f32.mrf.mxu0 }
 0xb73   :  { %v1596_v48 = vmul.f32 -1.442695, %v1256_v47 }
 0xb75   :  { %1933 = vpow2.f32 %v1596_v48 }
 0xb82   :  { %v1934_v49 = vpop.eup %1933 }
 0xb83   :  { %v1260_v50 = vadd.f32 1.0, %v1934_v49 }
 0xb85   :  { %1935 = vrcp.f32 %v1260_v50 }
 0xb92   :  { %v1936_v2 = vpop.eup %1935 }
 0xb93   :  { %v1274_v51 = vmul.f32 %v1936_v2, %v1174_v44 }
 0xb95   :  { %1835 = vmatmul.mubr.msk.f32.vlgmr.msra.gmra.mxu1 %vm114_vm2, %v1274_v51 }
 0xb96   :  { %1849 = vmatpush3.msra.mxu1 %v2227_v7  ;;  %1856 = vmatprep.mubr.msk.f32.mxu1 %vm2113_vm0, %v2112_v0 }
 0xb97   :  { %1850 = vmatprep.subr.mxu1 %v2112_v0 }
 0xb98   :  { %1851 = vmatpush3.msra.mxu1 %v2229_v8 }
 0xb99   :  { %1852 = vmatprep.subr.mxu1 %v2112_v0 }
 0xb9a   :  { %1853 = vmatpush3.msra.mxu1 %v2233_v9 }
 0xb9b   :  { %1854 = vmatprep.subr.mxu1 %v2112_v0 }
 0xb9c   :  { %1855 = vmatpush3.msra.mxu1 %v2237_v10  ;;  %v1356_v10 = vld [vmem:[#allocation3 + $0x1c] sm:$0xf] }
 0xbe3   :  { %v1265_v5 = vpop.permute.xlu0 %1264 }
 0xbe4   :  { %v1267_v52 = vadd.f32 %v1265_v5, %v1180_v4 }
 0xbe6   :  { %v1597_v53 = vmul.f32 -1.442695, %v1267_v52 }
 0xbe8   :  { %1937 = vpow2.f32 %v1597_v53 }
 0xbf5   :  { %v1938_v7 = vpop.eup %1937 }
 0xbf6   :  { %v1271_v56 = vadd.f32 1.0, %v1938_v7 }
 0xc55   :  { %v1344_v55 = vpop.f32.mrf.mxu1 }
 0xc56   :  { %v1348_v57 = vadd.f32 %v1344_v55, %v1182_v54 }
 0xc57   :  { %v1836_v58 = vpop.f32.mrf.mxu1 }
 0xc58   :  { %1939 = vtanh.f32 %v1348_v57 }
 0xc59   :  { %1941 = vrcp.f32 %v1271_v56 }
 0xc65   :  { %v1940_v8 = vpop.eup %1939 }
 0xc66   :  { %v1350_v59 = vsub.f32 %v1940_v8, %v1174_v44  ;;  %v1942_v9 = vpop.eup %1941 }
 0xc68   :  { %v1351_v60 = vmul.f32 %v1942_v9, %v1350_v59 }
 0xc6a   :  { %v1352_v0 = vadd.f32 %v1351_v60, %v1174_v44 }
 0xc6c   :  { %1846 = vmatmul.mubr.msk.f32.vlgmr.msra.gmra.mxu0 %vm114_vm2, %v1352_v0  ;;  %1354 = vst.msk [vmem:[#allocation12 + $0x18] sm:$0xf] %vm100_vm1, %v1352_v0 }
 0xd2c   :  { %v1430_v61 = vpop.f32.mrf.mxu0 }
 0xd2d   :  { %v1434_v62 = vadd.f32 %v1430_v61, %v1356_v10  ;;  %1442 = vrot.lane.b32.xlu1 %v1430_v61, %s2114_s3 }
 0xd2e   :  { %v1847_v63 = vpop.f32.mrf.mxu0 }
 0xd2f   :  { %v1600_v3 = vmul.f32 -1.442695, %v1434_v62 }
 0xd31   :  { %1943 = vpow2.f32 %v1600_v3 }
 0xd3e   :  { %v1944_v6 = vpop.eup %1943 }
 0xd3f   :  { %v1438_v11 = vadd.f32 1.0, %v1944_v6 }
 0xd41   :  { %1945 = vrcp.f32 %v1438_v11 }
 0xd4e   :  { %v1946_v12 = vpop.eup %1945 }
 0xd4f   :  { %v1452_v13 = vmul.f32 %v1946_v12, %v1352_v0 }
 0xd51   :  { %1857 = vmatmul.mubr.msk.f32.vlgmr.msra.gmra.mxu1 %vm114_vm2, %v1452_v13 }
 0xd9f   :  { %v1443_v15 = vpop.permute.xlu1 %1442 }
 0xda0   :  { %v1445_v16 = vadd.f32 %v1443_v15, %v1358_v14 }
 0xda2   :  { %v1601_v17 = vmul.f32 -1.442695, %v1445_v16 }
 0xda4   :  { %1947 = vpow2.f32 %v1601_v17 }
 0xdb1   :  { %v1948_v18 = vpop.eup %1947 }
 0xdb2   :  { %v1449_v21 = vadd.f32 1.0, %v1948_v18 }
 0xe11   :  { %v1522_v20 = vpop.f32.mrf.mxu1 }
 0xe12   :  { %v1526_v22 = vadd.f32 %v1522_v20, %v1360_v19 }
 0xe13   :  { %v1858_v23 = vpop.f32.mrf.mxu1 }
 0xe14   :  { %1949 = vtanh.f32 %v1526_v22 }
 0xe15   :  { %1951 = vrcp.f32 %v1449_v21 }
 0xe21   :  { %v1950_v24 = vpop.eup %1949 }
 0xe22   :  { %v1528_v25 = vsub.f32 %v1950_v24, %v1352_v0  ;;  %v1952_v26 = vpop.eup %1951 }
 0xe24   :  { %v1529_v27 = vmul.f32 %v1952_v26, %v1528_v25 }
 0xe26   :  { %v1530_v28 = vadd.f32 %v1529_v27, %v1352_v0 }
 0xe28   :  { %1532 = vst.msk [vmem:[#allocation12 + $0x1c] sm:$0xf] %vm100_vm1, %v1530_v28  ;;  %1533 = vst.msk [vmem:[#allocation2] sm:$0xf] %vm100_vm1, %v1530_v28 }
 0xe29   :  { %1537 = vst.msk [vmem:[#allocation13] sm:$0xf] %vm100_vm1, %v1530_v28 }
 0xe2a   :  { %2064 = shalt.err (!%p2061_p1)
}
 0xe2b   :  { %1549 = dma.vmem_to_hbm [thread:$0]  %s1544_s28, 512, %s2422_s6, [#allocation5], %s2105_s29, %s2105_s29, %s2106_s30  }
 0xe2c   :  { %s2073_s13 = scalar_lea.vmem %s1557_s9, 64  ;;  %p2078_p3 = scmp.lt.s32.totalorder %s1557_s9, %s1557_s9 }
 0xe2d   :  { %p2074_p2 = scmp.ne.s32.totalorder %s1557_s9, %s2073_s13  ;;  %p2079_p4 = scmp.lt.s32.totalorder %s2073_s13, %s2073_s13 }
 0xe2f   :  { %p2080_p5 = por %p2079_p4, %p2078_p3 }
 0xe31   :  { %p2081_p6 = pnand %p2080_p5, %p2074_p2 }
 0xe33   :  { %2084 = shalt.err (!%p2081_p6)
}
 0xe34   :  { %1559 = dma.vmem_to_hbm [thread:$0]  %s1557_s9, 64, %s2423_s7, [#allocation14]  }
 0xe35   :  { %2099 = dma.done.wait [#allocation5], 512  }
 0xe36   :  { %2100 = vsyncadd [#allocation5], 4294966784 }
 0xe37   :  { %2101 = dma.done.wait [#allocation14], 64  }
 0xe38   :  { %2102 = vsyncadd [#allocation14], 4294967232 }
 0xe39   :  { %1566 = vsyncpa [#allocation4], 1 }
 0xe3a   :  { %1567 = vsyncpa [#allocation7], 1 }
 0xe3b   :  { %1568 = vsyncpa [#allocation10], 1 }
 0xe3c   :  { %1569 = vsyncpa [#allocation5], 1 }
 0xe3d   :  { %1570 = vsyncpa [#allocation14], 1 }

</bundles_post_ra>
